<compile_context>
chip_gen: v7x
topology: tpu7x:2x2x1
jax: 0.10.0
libtpu: 0.0.40
codegen_flags: <defaults>
</compile_context>

<pallas_src>
import functools

import jax
import jax.numpy as jnp
from jax.experimental import pallas as pl
from jax.experimental.pallas import tpu as pltpu


def _round_up(x: int, m: int) -> int:
    return (x + m - 1) // m * m


def _estimate_vmem_bytes(d: int, tile_hw: int, k_pad: int) -> int:
    """Rough per-grid-step VMEM footprint (sublane/lane padded, f32)."""
    f32 = 4
    sub = lambda n: _round_up(max(n, 1), 8)
    lane = lambda n: _round_up(max(n, 1), 128)
    x_tile = sub(d) * lane(tile_hw) * f32 * 2        # streamed latents (double buffered)
    zq_tile = sub(d) * lane(tile_hw) * f32 * 2       # streamed z_q (double buffered)
    ind_tile = sub(1) * lane(tile_hw) * 4 * 2        # int32 indices (double buffered)
    e_res = sub(k_pad) * lane(d) * f32               # resident codebook  [K_pad, D]
    et_res = sub(d) * lane(k_pad) * f32              # resident codebook^T [D, K_pad]
    interm = 3 * sub(k_pad) * lane(tile_hw) * f32    # dist / iota / one-hot live values
    return x_tile + zq_tile + ind_tile + e_res + et_res + interm


def _choose_tile_hw(hw: int, batch: int, requested: int, d: int, k_pad: int) -> int:
    """Pick the hw (lane) tile width.

    - full width when hw fits in one tile (no padding needed),
    - otherwise a 128-aligned tile,
    - split when B == 1 so the grid has >= 2 parallel steps (v7x megacore),
    - shrunk while the per-step VMEM estimate exceeds the budget (keeps
      v5e's 16 MiB scoped default and v7x's 64 MiB physical VMEM safe).
    """
    budget = 40 * 1024 * 1024
    if hw <= requested:
        tile = hw
        if batch == 1 and hw >= 2 * 128:
            tile = _round_up(-(-hw // 2), 128)       # >= 2 grid steps for megacore
    else:
        tile = _round_up(requested, 128)
    while tile > 128 and _estimate_vmem_bytes(d, tile, k_pad) > budget:
        tile = max(128, _round_up(tile // 2, 128))
    return tile


def _vq_kernel(x_ref, e_ref, et_ref, zq_ref, ind_ref, sq_ref, *,
               num_embeddings: int, k_pad: int, hw_valid: int, tile_hw: int,
               mask_cols: bool, xe_dtype):
    """One (batch, hw-tile) grid step, everything in channel-major layout.

    x_ref:   [1, D, T]    f32  latents tile (streamed / pipelined)
    e_ref:   [K_pad, D]   f32  codebook (resident; padded rows are zero)
    et_ref:  [D, K_pad]   f32  codebook transpose (resident)
    zq_ref:  [1, D, T]    f32  quantized vectors (channel-major)
    ind_ref: [1, 1, T]    i32  argmin codebook indices (lane-dense row)
    sq_ref:  [1, 1, 1]    f32  per-tile sum of (z_q - x)^2 over valid columns
    """
    xt = x_ref[0]                                    # [D, T]
    e = e_ref[...]                                   # [K_pad, D]
    et = et_ref[...]                                 # [D, K_pad]

    # ||e_k||^2 column; padded codebook rows get +inf so they can never win
    # the argmin.  (K_pad * D VPU ops per step: negligible vs the matmul.)
    e2 = jnp.sum(e * e, axis=1, keepdims=True)       # [K_pad, 1]
    if k_pad != num_embeddings:
        krow = jax.lax.broadcasted_iota(jnp.int32, (k_pad, 1), 0)
        e2 = jnp.where(krow < num_embeddings, e2, jnp.inf)

    # Squared L2 distances, transposed: dist[k, t] = ||x_t - e_k||^2.
    # The 2.0 is folded into the small [D, T] operand, not the [K_pad, T] result.
    x2 = jnp.sum(xt * xt, axis=0, keepdims=True)     # [1, T]
    # TODO(synk): flip xe_dtype to bf16 on v6e/v7x once argmin tie-breaking vs
    # the f32 reference has been re-validated for the target codebook scale.
    xe2 = jnp.dot(e.astype(xe_dtype), (xt * 2.0).astype(xe_dtype),
                  preferred_element_type=jnp.float32)            # [K_pad, T]
    dist = x2 - xe2 + e2

    # First-minimal-index argmin over the codebook (sublane) axis; matches
    # torch.argmin tie-breaking.  Done on a float path; indices < 2^24 exact.
    min_val = jnp.min(dist, axis=0, keepdims=True)                       # [1, T]
    kids = jax.lax.broadcasted_iota(jnp.int32, dist.shape, 0).astype(jnp.float32)
    min_idx = jnp.min(jnp.where(dist == min_val, kids, float(k_pad)),
                      axis=0, keepdims=True)                             # [1, T]
    onehot = (kids == min_idx).astype(jnp.float32)                       # [K_pad, T]

    # TODO(synk): for very large K the one-hot matmul could be replaced by a
    # gather + min_val-based loss (halves MXU flops); kept for bit-exact z_q.
    zq = jnp.dot(et, onehot, preferred_element_type=jnp.float32)         # [D, T]

    zq_ref[...] = zq[None]
    ind_ref[...] = min_idx.astype(jnp.int32)[None]

    diff = zq - xt
    if mask_cols:
        # Columns past the real H*W (lane padding) must not contribute.
        col = (jax.lax.broadcasted_iota(jnp.int32, (1, tile_hw), 1)
               + pl.program_id(1) * tile_hw)
        diff = diff * (col < hw_valid).astype(jnp.float32)
    sq_ref[...] = jnp.sum(diff * diff)[None, None, None]


def vector_quantizer_forward(latents, embedding, beta: float = 0.25,
                             tile_hw: int = 512, distance_matmul_dtype=None):
    """Forward pass of the VQ-VAE VectorQuantizer.

    latents:   [B, D, H, W] (NCHW, like the PyTorch module)
    embedding: [K, D] codebook

    Returns (loss, z_q, perplexity, min_embed, min_ind) with the same forward
    values as the PyTorch module.  NOTE: forward-only -- the straight-through
    estimator / stop_gradient structure of the loss is NOT reproduced, so do
    not differentiate through this function.
    TODO(synk): wrap in jax.custom_vjp to reproduce the VQ straight-through backward.
    """
    B, D, H, W = latents.shape
    K = embedding.shape[0]
    HW = H * W
    N = B * HW

    k_pad = _round_up(K, 128)
    tile = _choose_tile_hw(HW, B, int(tile_hw), D, k_pad)
    hw_pad = _round_up(HW, tile)
    num_t = hw_pad // tile
    mask_cols = hw_pad != HW

    # Channel-major [B, D, H*W]: a pure reshape -- no NCHW->NHWC transpose and
    # no extra HBM round trip of the latents (the kernel consumes this layout).
    x3 = latents.reshape(B, D, HW).astype(jnp.float32)
    if mask_cols:
        x3 = jnp.pad(x3, ((0, 0), (0, 0), (0, hw_pad - HW)))

    e = embedding.astype(jnp.float32)
    if k_pad != K:
        e = jnp.pad(e, ((0, k_pad - K), (0, 0)))   # zero rows; masked via +inf in-kernel
    e_t = e.T                                       # tiny one-time transpose, stays resident

    xe_dtype = jnp.float32 if distance_matmul_dtype is None else distance_matmul_dtype
    kernel = functools.partial(
        _vq_kernel, num_embeddings=K, k_pad=k_pad, hw_valid=HW, tile_hw=tile,
        mask_cols=mask_cols, xe_dtype=xe_dtype)

    vmem_limit = int(min(max(2 * _estimate_vmem_bytes(D, tile, k_pad), 32 << 20),
                         64 << 20))

    out_shapes = (
        jax.ShapeDtypeStruct((B, D, hw_pad), jnp.float32),     # z_q (channel-major)
        jax.ShapeDtypeStruct((B, 1, hw_pad), jnp.int32),       # argmin indices
        jax.ShapeDtypeStruct((B * num_t, 1, 1), jnp.float32),  # partial sq-err sums
    )

    def build(single_buffer_codebook: bool):
        def resident_spec(shape):
            if single_buffer_codebook:
                # Constant block index -> double-buffering is pure VMEM waste.
                return pl.BlockSpec(shape, lambda b, t: (0, 0),
                                    pipeline_mode=pl.Buffered(1))
            return pl.BlockSpec(shape, lambda b, t: (0, 0))

        return pl.pallas_call(
            kernel,
            grid=(B, num_t),
            in_specs=[
                pl.BlockSpec((1, D, tile), lambda b, t: (b, 0, t)),   # latents tile
                resident_spec((k_pad, D)),                            # codebook
                resident_spec((D, k_pad)),                            # codebook^T
            ],
            out_specs=(
                pl.BlockSpec((1, D, tile), lambda b, t: (b, 0, t)),
                pl.BlockSpec((1, 1, tile), lambda b, t: (b, 0, t)),
                pl.BlockSpec((1, 1, 1), lambda b, t: (b * num_t + t, 0, 0)),
            ),
            out_shape=out_shapes,
            compiler_params=pltpu.CompilerParams(
                dimension_semantics=("parallel", "parallel"),
                vmem_limit_bytes=vmem_limit),
        )

    if hasattr(pl, "Buffered"):
        try:
            zq3, ind3, sq = build(True)(x3, e, e_t)
        except Exception:  # older JAX without pipeline_mode / Buffered(1) support
            zq3, ind3, sq = build(False)(x3, e, e_t)
    else:
        zq3, ind3, sq = build(False)(x3, e, e_t)

    # Epilogue: slices / reshapes only -- no transposes, no extra HBM passes
    # over the big slabs beyond what the module API forces us to return.
    z_q = zq3[:, :, :HW].reshape(B, D, H, W)             # NCHW straight-through value
    min_ind = ind3[:, 0, :HW].reshape(N, 1)              # [N, 1] int32
    loss = (1.0 + beta) * jnp.sum(sq) / (N * D)          # forward value of the VQ loss
    min_embed = jax.nn.one_hot(min_ind[:, 0], K, dtype=jnp.float32)   # API-mandated [N, K]
    e_mean = jnp.mean(min_embed, axis=0)
    perplexity = jnp.exp(-jnp.sum(e_mean * jnp.log(e_mean + 1e-10)))
    return loss, z_q, perplexity, min_embed, min_ind


def _reference(latents, embedding, beta):
    """Pure-JAX mirror of the PyTorch forward (for correctness checking)."""
    B, D, H, W = latents.shape
    x = jnp.transpose(latents, (0, 2, 3, 1)).reshape(-1, D)
    dist = (jnp.sum(x ** 2, axis=1, keepdims=True)
            - 2.0 * x @ embedding.T
            + jnp.sum(embedding ** 2, axis=1))
    ind = jnp.argmin(dist, axis=1)
    onehot = jax.nn.one_hot(ind, embedding.shape[0], dtype=jnp.float32)
    zq = onehot @ embedding
    loss = (1.0 + beta) * jnp.mean((zq - x) ** 2)
    e_mean = jnp.mean(onehot, axis=0)
    perp = jnp.exp(-jnp.sum(e_mean * jnp.log(e_mean + 1e-10)))
    zq_img = jnp.transpose(zq.reshape(B, H, W, D), (0, 3, 1, 2))
    return loss, zq_img, perp, onehot, ind[:, None]


def _check(latents, embedding, beta, **kw):
    loss, z_q, perp, onehot, ind = jax.block_until_ready(
        vector_quantizer_forward(latents, embedding, beta, **kw))
    r_loss, r_zq, r_perp, r_onehot, r_ind = _reference(latents, embedding, beta)
    assert jnp.allclose(loss, r_loss, atol=1e-5, rtol=1e-5)
    assert jnp.allclose(z_q, r_zq, atol=1e-5, rtol=1e-5)
    assert jnp.allclose(perp, r_perp, atol=1e-5, rtol=1e-5)
    assert jnp.array_equal(onehot, r_onehot)
    assert jnp.array_equal(ind, r_ind.astype(jnp.int32))


if __name__ == "__main__":
    # Small, deterministic setup: num_embeddings K=16, embedding_dim D=4, beta=0.25.
    K, D, beta = 16, 4, 0.25
    key = jax.random.PRNGKey(0)
    k_lat, k_emb = jax.random.split(key)
    # nn.Embedding weight init: uniform(-1/K, 1/K), shape [K, D].
    embedding = jax.random.uniform(k_emb, (K, D), dtype=jnp.float32,
                                   minval=-1.0 / K, maxval=1.0 / K)

    # 1) Baseline: [2, 4, 16, 16], one full-width hw tile per batch entry.
    latents = jax.random.normal(k_lat, (2, D, 16, 16), dtype=jnp.float32)
    _check(latents, embedding, beta)

    # 2) Same data, multiple hw tiles per batch entry (grid (2, 2)).
    _check(latents, embedding, beta, tile_hw=128)

    # 3) H*W = 100 not a multiple of the lane tile: exercises hw padding + masking.
    lat2 = jax.random.normal(jax.random.PRNGKey(1), (3, D, 10, 10), dtype=jnp.float32)
    _check(lat2, embedding, beta, tile_hw=64)

    # 3b) Same data with the default tile: single full-width (non-128-lane) block.
    _check(lat2, embedding, beta)

    # 4) B == 1: exercises the hw split that keeps >= 2 parallel grid steps (v7x).
    _check(latents[:1], embedding, beta)

    print("KERNEL_OK")
</pallas_src>

<mosaic_0001>
module attributes {stable_mosaic.version = 11 : i64} {
  func.func @_vq_kernel(%arg0: i32, %arg1: i32, %arg2: memref<1x4x256xf32, #tpu.memory_space<vmem>>, %arg3: memref<128x4xf32, #tpu.memory_space<vmem>>, %arg4: memref<4x128xf32, #tpu.memory_space<vmem>>, %arg5: memref<1x4x256xf32, #tpu.memory_space<vmem>>, %arg6: memref<1x1x256xi32, #tpu.memory_space<vmem>>, %arg7: memref<1x1x1xf32, #tpu.memory_space<vmem>>) attributes {dimension_semantics = [#tpu.dimension_semantics<parallel>, #tpu.dimension_semantics<parallel>], iteration_bounds = array<i64: 2, 1>, scalar_prefetch = 0 : i64, scratch_operands = 0 : i64, tpu.core_type = #tpu.core_type<tc>, window_params = [{transform_indices = @transform_0, window_bounds = array<i64: 1, 4, 256>}, {pipeline_mode = #tpu.pipeline_mode<synchronous>, transform_indices = @transform_1, window_bounds = array<i64: 128, 4>}, {pipeline_mode = #tpu.pipeline_mode<synchronous>, transform_indices = @transform_2, window_bounds = array<i64: 4, 128>}, {transform_indices = @transform_3, window_bounds = array<i64: 1, 4, 256>}, {transform_indices = @transform_4, window_bounds = array<i64: 1, 1, 256>}, {transform_indices = @transform_5, window_bounds = array<i64: 1, 1, 1>}]} {
    %c0 = arith.constant 0 : index
    %c0_0 = arith.constant 0 : index
    %c0_1 = arith.constant 0 : index
    %0 = vector.load %arg2[%c0, %c0_0, %c0_1] : memref<1x4x256xf32, #tpu.memory_space<vmem>>, vector<1x4x256xf32>
    %1 = vector.shape_cast %0 : vector<1x4x256xf32> to vector<4x256xf32>
    %c0_2 = arith.constant 0 : index
    %c0_3 = arith.constant 0 : index
    %2 = vector.load %arg3[%c0_2, %c0_3] : memref<128x4xf32, #tpu.memory_space<vmem>>, vector<128x4xf32>
    %c0_4 = arith.constant 0 : index
    %c0_5 = arith.constant 0 : index
    %3 = vector.load %arg4[%c0_4, %c0_5] : memref<4x128xf32, #tpu.memory_space<vmem>>, vector<4x128xf32>
    %4 = arith.mulf %2, %2 : vector<128x4xf32>
    %cst = arith.constant dense<0.000000e+00> : vector<128xf32>
    %5 = vector.multi_reduction <add>, %4, %cst [1] : vector<128x4xf32> to vector<128xf32>
    %6 = vector.shape_cast %5 : vector<128xf32> to vector<128x1xf32>
    %7 = tpu.iota {dimensions = array<i32: 0>} : vector<128x1xi32>
    %c16_i32 = arith.constant 16 : i32
    %8 = vector.broadcast %c16_i32 : i32 to vector<128x1xi32>
    %9 = arith.cmpi slt, %7, %8 : vector<128x1xi32>
    %cst_6 = arith.constant 0x7F800000 : f32
    %10 = vector.broadcast %cst_6 : f32 to vector<128x1xf32>
    %11 = arith.select %9, %6, %10 : vector<128x1xi1>, vector<128x1xf32>
    %12 = arith.mulf %1, %1 : vector<4x256xf32>
    %cst_7 = arith.constant dense<0.000000e+00> : vector<256xf32>
    %13 = vector.multi_reduction <add>, %12, %cst_7 [0] : vector<4x256xf32> to vector<256xf32>
    %14 = vector.shape_cast %13 : vector<256xf32> to vector<1x256xf32>
    %cst_8 = arith.constant 2.000000e+00 : f32
    %15 = vector.broadcast %cst_8 : f32 to vector<4x256xf32>
    %16 = arith.mulf %1, %15 : vector<4x256xf32>
    %cst_9 = arith.constant dense<0.000000e+00> : vector<128x256xf32>
    %17 = tpu.matmul %2, %16, %cst_9 {dimension_numbers = #tpu.dot_dimension_numbers<[1], [0], [0], [1], [0, 0, 1, 1], [], []>} : vector<128x4xf32>, vector<4x256xf32>, vector<128x256xf32> -> vector<128x256xf32>
    %18 = vector.broadcast %14 : vector<1x256xf32> to vector<128x256xf32>
    %19 = arith.subf %18, %17 : vector<128x256xf32>
    %20 = vector.broadcast %11 : vector<128x1xf32> to vector<128x256xf32>
    %21 = arith.addf %19, %20 : vector<128x256xf32>
    %cst_10 = arith.constant dense<0x7F800000> : vector<256xf32>
    %22 = vector.multi_reduction <minimumf>, %21, %cst_10 [0] : vector<128x256xf32> to vector<256xf32>
    %23 = vector.shape_cast %22 : vector<256xf32> to vector<1x256xf32>
    %24 = tpu.iota {dimensions = array<i32: 0>} : vector<128x256xi32>
    %25 = arith.sitofp %24 : vector<128x256xi32> to vector<128x256xf32>
    %26 = vector.broadcast %23 : vector<1x256xf32> to vector<128x256xf32>
    %27 = arith.cmpf oeq, %21, %26 : vector<128x256xf32>
    %cst_11 = arith.constant 1.280000e+02 : f32
    %28 = vector.broadcast %cst_11 : f32 to vector<128x256xf32>
    %29 = arith.select %27, %25, %28 : vector<128x256xi1>, vector<128x256xf32>
    %cst_12 = arith.constant dense<0x7F800000> : vector<256xf32>
    %30 = vector.multi_reduction <minimumf>, %29, %cst_12 [0] : vector<128x256xf32> to vector<256xf32>
    %31 = vector.shape_cast %30 : vector<256xf32> to vector<1x256xf32>
    %32 = vector.broadcast %31 : vector<1x256xf32> to vector<128x256xf32>
    %33 = arith.cmpf oeq, %25, %32 : vector<128x256xf32>
    %34 = arith.extui %33 : vector<128x256xi1> to vector<128x256xi32>
    %35 = arith.sitofp %34 : vector<128x256xi32> to vector<128x256xf32>
    %cst_13 = arith.constant dense<0.000000e+00> : vector<4x256xf32>
    %36 = tpu.matmul %3, %35, %cst_13 {dimension_numbers = #tpu.dot_dimension_numbers<[1], [0], [0], [1], [0, 0, 1, 1], [], []>} : vector<4x128xf32>, vector<128x256xf32>, vector<4x256xf32> -> vector<4x256xf32>
    %37 = vector.shape_cast %36 : vector<4x256xf32> to vector<1x4x256xf32>
    %c0_14 = arith.constant 0 : index
    %c0_15 = arith.constant 0 : index
    %c0_16 = arith.constant 0 : index
    %38 = vector.load %arg5[%c0_14, %c0_15, %c0_16] : memref<1x4x256xf32, #tpu.memory_space<vmem>>, vector<1x4x256xf32>
    tpu.vector_store %arg5[%c0_14, %c0_15, %c0_16], %37 {strides = array<i32>} : memref<1x4x256xf32, #tpu.memory_space<vmem>>, vector<1x4x256xf32>,
    %39 = arith.fptosi %31 : vector<1x256xf32> to vector<1x256xi32>
    %40 = vector.shape_cast %39 : vector<1x256xi32> to vector<1x1x256xi32>
    %c0_17 = arith.constant 0 : index
    %c0_18 = arith.constant 0 : index
    %c0_19 = arith.constant 0 : index
    %41 = vector.load %arg6[%c0_17, %c0_18, %c0_19] : memref<1x1x256xi32, #tpu.memory_space<vmem>>, vector<1x1x256xi32>
    tpu.vector_store %arg6[%c0_17, %c0_18, %c0_19], %40 {strides = array<i32>} : memref<1x1x256xi32, #tpu.memory_space<vmem>>, vector<1x1x256xi32>,
    %42 = arith.subf %36, %1 : vector<4x256xf32>
    %43 = arith.mulf %42, %42 : vector<4x256xf32>
    %44 = vector.shape_cast %43 : vector<4x256xf32> to vector<1x4x256xf32>
    %cst_20 = arith.constant dense<0.000000e+00> : vector<1xf32>
    %45 = vector.multi_reduction <add>, %44, %cst_20 [1, 2] : vector<1x4x256xf32> to vector<1xf32>
    %46 = vector.shape_cast %45 : vector<1xf32> to vector<1x1x1xf32>
    %47 = vector.extract %46[0, 0, 0] : f32 from vector<1x1x1xf32>
    %48 = vector.broadcast %47 : f32 to vector<1x1x1xf32>
    %c0_21 = arith.constant 0 : index
    %c0_22 = arith.constant 0 : index
    %c0_23 = arith.constant 0 : index
    %49 = vector.load %arg7[%c0_21, %c0_22, %c0_23] : memref<1x1x1xf32, #tpu.memory_space<vmem>>, vector<1x1x1xf32>
    tpu.vector_store %arg7[%c0_21, %c0_22, %c0_23], %48 {strides = array<i32>} : memref<1x1x1xf32, #tpu.memory_space<vmem>>, vector<1x1x1xf32>,
    return
  }
  func.func @transform_0(%arg0: i32, %arg1: i32) -> (i32, i32, i32) {
    %c0_i32 = arith.constant 0 : i32
    %c0_i32_0 = arith.constant 0 : i32
    return %arg0, %c0_i32, %arg1 : i32, i32, i32
  }
  func.func @transform_1(%arg0: i32, %arg1: i32) -> (i32, i32) {
    %c0_i32 = arith.constant 0 : i32
    %c0_i32_0 = arith.constant 0 : i32
    %c0_i32_1 = arith.constant 0 : i32
    return %c0_i32, %c0_i32_0 : i32, i32
  }
  func.func @transform_2(%arg0: i32, %arg1: i32) -> (i32, i32) {
    %c0_i32 = arith.constant 0 : i32
    %c0_i32_0 = arith.constant 0 : i32
    %c0_i32_1 = arith.constant 0 : i32
    return %c0_i32, %c0_i32_0 : i32, i32
  }
  func.func @transform_3(%arg0: i32, %arg1: i32) -> (i32, i32, i32) {
    %c0_i32 = arith.constant 0 : i32
    %c0_i32_0 = arith.constant 0 : i32
    return %arg0, %c0_i32, %arg1 : i32, i32, i32
  }
  func.func @transform_4(%arg0: i32, %arg1: i32) -> (i32, i32, i32) {
    %c0_i32 = arith.constant 0 : i32
    %c0_i32_0 = arith.constant 0 : i32
    return %arg0, %c0_i32, %arg1 : i32, i32, i32
  }
  func.func @transform_5(%arg0: i32, %arg1: i32) -> (i32, i32, i32) {
    %c1_i32 = arith.constant 1 : i32
    %0 = arith.muli %arg0, %c1_i32 : i32
    %1 = arith.addi %0, %arg1 : i32
    %c0_i32 = arith.constant 0 : i32
    %c0_i32_0 = arith.constant 0 : i32
    %c0_i32_1 = arith.constant 0 : i32
    return %1, %c0_i32, %c0_i32_0 : i32, i32, i32
  }
}

module attributes {stable_mosaic.version = 11 : i64} {
  func.func @_vq_kernel(%arg0: i32, %arg1: i32, %arg2: memref<1x4x256xf32, #tpu.memory_space<vmem>>, %arg3: memref<128x4xf32, #tpu.memory_space<vmem>>, %arg4: memref<4x128xf32, #tpu.memory_space<vmem>>, %arg5: memref<1x4x256xf32, #tpu.memory_space<vmem>>, %arg6: memref<1x1x256xi32, #tpu.memory_space<vmem>>, %arg7: memref<1x1x1xf32, #tpu.memory_space<vmem>>) attributes {dimension_semantics = [#tpu.dimension_semantics<parallel>, #tpu.dimension_semantics<parallel>], iteration_bounds = array<i64: 2, 1>, scalar_prefetch = 0 : i64, scratch_operands = 0 : i64, tpu.core_type = #tpu.core_type<tc>, window_params = [{transform_indices = @transform_0, window_bounds = array<i64: 1, 4, 256>}, {pipeline_mode = #tpu.pipeline_mode<synchronous>, transform_indices = @transform_1, window_bounds = array<i64: 128, 4>}, {pipeline_mode = #tpu.pipeline_mode<synchronous>, transform_indices = @transform_2, window_bounds = array<i64: 4, 128>}, {transform_indices = @transform_3, window_bounds = array<i64: 1, 4, 256>}, {transform_indices = @transform_4, window_bounds = array<i64: 1, 1, 256>}, {transform_indices = @transform_5, window_bounds = array<i64: 1, 1, 1>}]} {
    %c0 = arith.constant 0 : index
    %c0_0 = arith.constant 0 : index
    %c0_1 = arith.constant 0 : index
    %0 = vector.load %arg2[%c0, %c0_0, %c0_1] : memref<1x4x256xf32, #tpu.memory_space<vmem>>, vector<1x4x256xf32>
    %1 = vector.shape_cast %0 : vector<1x4x256xf32> to vector<4x256xf32>
    %c0_2 = arith.constant 0 : index
    %c0_3 = arith.constant 0 : index
    %2 = vector.load %arg3[%c0_2, %c0_3] : memref<128x4xf32, #tpu.memory_space<vmem>>, vector<128x4xf32>
    %c0_4 = arith.constant 0 : index
    %c0_5 = arith.constant 0 : index
    %3 = vector.load %arg4[%c0_4, %c0_5] : memref<4x128xf32, #tpu.memory_space<vmem>>, vector<4x128xf32>
    %4 = arith.mulf %2, %2 : vector<128x4xf32>
    %cst = arith.constant dense<0.000000e+00> : vector<128xf32>
    %5 = vector.multi_reduction <add>, %4, %cst [1] : vector<128x4xf32> to vector<128xf32>
    %6 = vector.shape_cast %5 : vector<128xf32> to vector<128x1xf32>
    %7 = tpu.iota {dimensions = array<i32: 0>} : vector<128x1xi32>
    %c16_i32 = arith.constant 16 : i32
    %8 = vector.broadcast %c16_i32 : i32 to vector<128x1xi32>
    %9 = arith.cmpi slt, %7, %8 : vector<128x1xi32>
    %cst_6 = arith.constant 0x7F800000 : f32
    %10 = vector.broadcast %cst_6 : f32 to vector<128x1xf32>
    %11 = arith.select %9, %6, %10 : vector<128x1xi1>, vector<128x1xf32>
    %12 = arith.mulf %1, %1 : vector<4x256xf32>
    %cst_7 = arith.constant dense<0.000000e+00> : vector<256xf32>
    %13 = vector.multi_reduction <add>, %12, %cst_7 [0] : vector<4x256xf32> to vector<256xf32>
    %14 = vector.shape_cast %13 : vector<256xf32> to vector<1x256xf32>
    %cst_8 = arith.constant 2.000000e+00 : f32
    %15 = vector.broadcast %cst_8 : f32 to vector<4x256xf32>
    %16 = arith.mulf %1, %15 : vector<4x256xf32>
    %cst_9 = arith.constant dense<0.000000e+00> : vector<128x256xf32>
    %17 = tpu.matmul %2, %16, %cst_9 {dimension_numbers = #tpu.dot_dimension_numbers<[1], [0], [0], [1], [0, 0, 1, 1], [], []>} : vector<128x4xf32>, vector<4x256xf32>, vector<128x256xf32> -> vector<128x256xf32>
    %18 = vector.broadcast %14 : vector<1x256xf32> to vector<128x256xf32>
    %19 = arith.subf %18, %17 : vector<128x256xf32>
    %20 = vector.broadcast %11 : vector<128x1xf32> to vector<128x256xf32>
    %21 = arith.addf %19, %20 : vector<128x256xf32>
    %cst_10 = arith.constant dense<0x7F800000> : vector<256xf32>
    %22 = vector.multi_reduction <minimumf>, %21, %cst_10 [0] : vector<128x256xf32> to vector<256xf32>
    %23 = vector.shape_cast %22 : vector<256xf32> to vector<1x256xf32>
    %24 = tpu.iota {dimensions = array<i32: 0>} : vector<128x256xi32>
    %25 = arith.sitofp %24 : vector<128x256xi32> to vector<128x256xf32>
    %26 = vector.broadcast %23 : vector<1x256xf32> to vector<128x256xf32>
    %27 = arith.cmpf oeq, %21, %26 : vector<128x256xf32>
    %cst_11 = arith.constant 1.280000e+02 : f32
    %28 = vector.broadcast %cst_11 : f32 to vector<128x256xf32>
    %29 = arith.select %27, %25, %28 : vector<128x256xi1>, vector<128x256xf32>
    %cst_12 = arith.constant dense<0x7F800000> : vector<256xf32>
    %30 = vector.multi_reduction <minimumf>, %29, %cst_12 [0] : vector<128x256xf32> to vector<256xf32>
    %31 = vector.shape_cast %30 : vector<256xf32> to vector<1x256xf32>
    %32 = vector.broadcast %31 : vector<1x256xf32> to vector<128x256xf32>
    %33 = arith.cmpf oeq, %25, %32 : vector<128x256xf32>
    %34 = arith.extui %33 : vector<128x256xi1> to vector<128x256xi32>
    %35 = arith.sitofp %34 : vector<128x256xi32> to vector<128x256xf32>
    %cst_13 = arith.constant dense<0.000000e+00> : vector<4x256xf32>
    %36 = tpu.matmul %3, %35, %cst_13 {dimension_numbers = #tpu.dot_dimension_numbers<[1], [0], [0], [1], [0, 0, 1, 1], [], []>} : vector<4x128xf32>, vector<128x256xf32>, vector<4x256xf32> -> vector<4x256xf32>
    %37 = vector.shape_cast %36 : vector<4x256xf32> to vector<1x4x256xf32>
    %c0_14 = arith.constant 0 : index
    %c0_15 = arith.constant 0 : index
    %c0_16 = arith.constant 0 : index
    %38 = vector.load %arg5[%c0_14, %c0_15, %c0_16] : memref<1x4x256xf32, #tpu.memory_space<vmem>>, vector<1x4x256xf32>
    tpu.vector_store %arg5[%c0_14, %c0_15, %c0_16], %37 {strides = array<i32>} : memref<1x4x256xf32, #tpu.memory_space<vmem>>, vector<1x4x256xf32>,
    %39 = arith.fptosi %31 : vector<1x256xf32> to vector<1x256xi32>
    %40 = vector.shape_cast %39 : vector<1x256xi32> to vector<1x1x256xi32>
    %c0_17 = arith.constant 0 : index
    %c0_18 = arith.constant 0 : index
    %c0_19 = arith.constant 0 : index
    %41 = vector.load %arg6[%c0_17, %c0_18, %c0_19] : memref<1x1x256xi32, #tpu.memory_space<vmem>>, vector<1x1x256xi32>
    tpu.vector_store %arg6[%c0_17, %c0_18, %c0_19], %40 {strides = array<i32>} : memref<1x1x256xi32, #tpu.memory_space<vmem>>, vector<1x1x256xi32>,
    %42 = arith.subf %36, %1 : vector<4x256xf32>
    %43 = arith.mulf %42, %42 : vector<4x256xf32>
    %44 = vector.shape_cast %43 : vector<4x256xf32> to vector<1x4x256xf32>
    %cst_20 = arith.constant dense<0.000000e+00> : vector<1xf32>
    %45 = vector.multi_reduction <add>, %44, %cst_20 [1, 2] : vector<1x4x256xf32> to vector<1xf32>
    %46 = vector.shape_cast %45 : vector<1xf32> to vector<1x1x1xf32>
    %47 = vector.extract %46[0, 0, 0] : f32 from vector<1x1x1xf32>
    %48 = vector.broadcast %47 : f32 to vector<1x1x1xf32>
    %c0_21 = arith.constant 0 : index
    %c0_22 = arith.constant 0 : index
    %c0_23 = arith.constant 0 : index
    %49 = vector.load %arg7[%c0_21, %c0_22, %c0_23] : memref<1x1x1xf32, #tpu.memory_space<vmem>>, vector<1x1x1xf32>
    tpu.vector_store %arg7[%c0_21, %c0_22, %c0_23], %48 {strides = array<i32>} : memref<1x1x1xf32, #tpu.memory_space<vmem>>, vector<1x1x1xf32>,
    return
  }
  func.func @transform_0(%arg0: i32, %arg1: i32) -> (i32, i32, i32) {
    %c0_i32 = arith.constant 0 : i32
    %c0_i32_0 = arith.constant 0 : i32
    return %arg0, %c0_i32, %arg1 : i32, i32, i32
  }
  func.func @transform_1(%arg0: i32, %arg1: i32) -> (i32, i32) {
    %c0_i32 = arith.constant 0 : i32
    %c0_i32_0 = arith.constant 0 : i32
    %c0_i32_1 = arith.constant 0 : i32
    return %c0_i32, %c0_i32_0 : i32, i32
  }
  func.func @transform_2(%arg0: i32, %arg1: i32) -> (i32, i32) {
    %c0_i32 = arith.constant 0 : i32
    %c0_i32_0 = arith.constant 0 : i32
    %c0_i32_1 = arith.constant 0 : i32
    return %c0_i32, %c0_i32_0 : i32, i32
  }
  func.func @transform_3(%arg0: i32, %arg1: i32) -> (i32, i32, i32) {
    %c0_i32 = arith.constant 0 : i32
    %c0_i32_0 = arith.constant 0 : i32
    return %arg0, %c0_i32, %arg1 : i32, i32, i32
  }
  func.func @transform_4(%arg0: i32, %arg1: i32) -> (i32, i32, i32) {
    %c0_i32 = arith.constant 0 : i32
    %c0_i32_0 = arith.constant 0 : i32
    return %arg0, %c0_i32, %arg1 : i32, i32, i32
  }
  func.func @transform_5(%arg0: i32, %arg1: i32) -> (i32, i32, i32) {
    %c1_i32 = arith.constant 1 : i32
    %0 = arith.muli %arg0, %c1_i32 : i32
    %1 = arith.addi %0, %arg1 : i32
    %c0_i32 = arith.constant 0 : i32
    %c0_i32_0 = arith.constant 0 : i32
    %c0_i32_1 = arith.constant 0 : i32
    return %1, %c0_i32, %c0_i32_0 : i32, i32, i32
  }
}

</mosaic_0001>

<bundles_post_ra>
// kernel: tpu_custom_call.1
= control target key start
LH: loop header
LB: loop body
LE: loop exit
PB: predicated region body
PF: predicated region fallthrough
CT: control target
= control target key end

     0   :  { %s2319_s0 = inlined_call_operand.vmem [shape: f32[2,4,256], index: 0, kind: input, shape index: {}]   ;;  %s2320_s1 = inlined_call_operand.vmem [shape: f32[128,4], index: 1, kind: input, shape index: {}]   ;;  %s2321_s2 = inlined_call_operand.vmem [shape: f32[4,128], index: 2, kind: input, shape index: {}]   ;;  %s2322_s3 = inlined_call_operand.hbm [shape: f32[2,4,256], index: 3, kind: output, shape index: {0}]   ;;  %s2323_s4 = inlined_call_operand.hbm [shape: s32[2,1,256], index: 4, kind: output, shape index: {1}]   ;;  %s2324_s5 = inlined_call_operand.vmem [shape: f32[2,1,1], index: 5, kind: output, shape index: {2}]  }
   0x1   :  { %2326 = sst [smem:[#allocation8_spill]] %s2319_s0 }
   0x2   :  { %11 = vsyncpa [#allocation3], 0 }
   0x3   :  { %13 = vsyncpa [#allocation3 + $0x1], 0 }
   0x4   :  { %14 = vsyncpa [#allocation5], 0 }
   0x5   :  { %16 = vsyncpa [#allocation5 + $0x1], 0  ;;  %s1620_s18 = smov 0   ;;  %s1622_s19 = smov 0  }
   0x6   :  { %s1624_s20 = smov 0   ;;  %s1626_s21 = smov 0  }
   0x7   :  { %s1628_s22 = smov 0   ;;  %s1630_s23 = smov 0  }
   0x8 LB: > { %s1269_s24 = sadd.s32 4294967295, %s1583_s23   ;;  %s1270_s25 = sadd.s32 4294967294, %s1583_s23   ;;  %s1583_s23 = sphi %s1630_s23, %s22_s23   ;;  %s1579_s22 = sphi %s1628_s22, %s2344_s22   ;;  %s1575_s21 = sphi %s1626_s21, %s2343_s21   ;;  %s1571_s20 = sphi %s1624_s20, %s2342_s20   ;;  %s1567_s19 = sphi %s1622_s19, %s2341_s19   ;;  %s1563_s18 = sphi %s1620_s18, %s2340_s18  }
   0x9   : > { %s34_s26 = sadd.s32 1, %s1579_s22  ;;  %s113_s27 = sadd.s32 1, %s1571_s20 }
   0xa   : > { %p36_p0 = scmp.ge.s32.totalorder %s34_s26, 2  ;;  %p123_p1 = scmp.ne.s32.totalorder %s1571_s20, %s1567_s19 }
   0xb   : > { %p124_p2 = scmp.eq.s32.totalorder %s1269_s24, 1  ;;  %p129_p3 = scmp.ne.s32.totalorder %s1567_s19, %s1563_s18 }
   0xc   : > { %s2346_s26 = smov (%p36_p0, %s34_s26), 0  ;;  %p130_p5 = scmp.eq.s32.totalorder %s1270_s25, 1 }
   0xd   : > { %p1660_p4 = por %p124_p2, %p123_p1  ;;  %s108_s29 = ssub.s32 %s1579_s22, %s2346_s26 }
   0xe   : > { %p1273_p6 = scmp.ge.s32.totalorder %s1583_s23, 1  ;;  %p111_p7 = scmp.eq.s32.totalorder %s108_s29, 0 }
   0xf   : > { %p1667_p8 = por %p130_p5, %p129_p3  ;;  %p223_p9 = scmp.lt.s32.totalorder %s1583_s23, 3 }
  0x10   : > { %s1673_s6 = scalar_select %p111_p7, %s1571_s20, %s113_s27  }
  0x11   : > { %p224_p10 = pnand %p1273_p6, %p223_p9 }
  0x12   : > { %p265_p11 = scmp.lt.s32.totalorder (!%p224_p10), %s1575_s21, 1  ;;  %v282_v0 = vld [vmem:[%s2320_s1] sm:$0xff] (!%p224_p10)  ;;  %v283_v1 = vld [vmem:[%s2320_s1 + $0x8] sm:$0xff] (!%p224_p10)  ;;  %v1585_v2 = vmov (!%p224_p10), 0.0   ;;  %vm315_vm0 = vcmask (!%p224_p10), 31744   ;;  %s2329_s0 = sld [smem:[#allocation8_spill]] (!%p224_p10) }
  0x13   : > { %227 = sbr.rel (%p224_p10) target bundleno = 832 (0x340), region = 32  ;;  %551 = vmatprep.mubr.f32.mxu0 (!%p224_p10), %v1585_v2  ;;  %v299_v3 = vmul.f32 (!%p224_p10), %v282_v0, %v282_v0  ;;  %v300_v4 = vmul.f32 (!%p224_p10), %v283_v1, %v283_v1  ;;  %1036 = vmatprep.mubr.f32.mxu1 (!%p224_p10), %v1585_v2  ;;  %vm2325_vm1 = vcmask (!%p224_p10), 1043456   ;;  %v284_v10 = vld [vmem:[%s2320_s1 + $0x10] sm:$0xff] (!%p224_p10)  ;;  %v285_v11 = vld [vmem:[%s2320_s1 + $0x18] sm:$0xff] (!%p224_p10)  ;;  %v286_v12 = vld [vmem:[%s2320_s1 + $0x20] sm:$0xff] (!%p224_p10)  ;;  %s2170_s16 = sand.u32 (!%p224_p10), 1, %s1567_s19  }
  0x14   : > { %v287_v13 = vld [vmem:[%s2320_s1 + $0x28] sm:$0xff] (!%p224_p10)  ;;  %v288_v14 = vld [vmem:[%s2320_s1 + $0x30] sm:$0xff] (!%p224_p10)  ;;  %v289_v15 = vld [vmem:[%s2320_s1 + $0x38] sm:$0xff] (!%p224_p10)  ;;  %s1275_s17 = sshll.u32 (!%p224_p10), %s2170_s16, 1  ;;  %s1274_s29 = sshll.u32 (!%p224_p10), %s2170_s16, 3 }
  0x15   : > { %v316_v5 = vsel (!%p224_p10), %vm315_vm0, %v299_v3, 0.0  ;;  %v319_v6 = vsel (!%p224_p10), %vm315_vm0, %v300_v4, 0.0  ;;  %v290_v16 = vld [vmem:[%s2320_s1 + $0x40] sm:$0xff] (!%p224_p10)  ;;  %v291_v17 = vld [vmem:[%s2320_s1 + $0x48] sm:$0xff] (!%p224_p10)  ;;  %v292_v18 = vld [vmem:[%s2320_s1 + $0x50] sm:$0xff] (!%p224_p10)  ;;  %s2195_s24 = scalar_lea.vmem (!%p224_p10), [#allocation4], %s1275_s17 }
  0x16   : > { %317 = vadd.xlane.f32.xlu0 (!%p224_p10), %v316_v5  ;;  %v293_v19 = vld [vmem:[%s2320_s1 + $0x58] sm:$0xff] (!%p224_p10)  ;;  %v294_v20 = vld [vmem:[%s2320_s1 + $0x60] sm:$0xff] (!%p224_p10)  ;;  %v295_v21 = vld [vmem:[%s2320_s1 + $0x68] sm:$0xff] (!%p224_p10)  ;;  %s250_s7 = scalar_lea.vmem (!%p224_p10), [#allocation2], %s1274_s29  ;;  %s1369_s8 = sshll.u32 (!%p224_p10), %s1575_s21, 7 }
  0x17   : > { %v296_v22 = vld [vmem:[%s2320_s1 + $0x70] sm:$0xff] (!%p224_p10)  ;;  %v297_v23 = vld [vmem:[%s2320_s1 + $0x78] sm:$0xff] (!%p224_p10)  ;;  %s1118_s13 = sshll.u32 (!%p224_p10), %s250_s7, 4  ;;  %s1093_s14 = scalar_lea.sflag (!%p224_p10), [#allocation3], %s2170_s16  ;;  %s1119_s13 = int_to_ptr.vmem [resolvable:$true] %s1118_s13 }
  0x18   : > { %s1588_s17 = smov (!%p224_p10), [#allocation2]  }
  0x19   : > { %s1477_s25 = sshll.u32 (!%p224_p10), %s1588_s17, 4  ;;  %s1478_s25 = int_to_ptr.vmem [resolvable:$false] %s1477_s25 }
  0x1a   : > { %s1683_s11 = scalar_select %p265_p11, %s1575_s21, 1  ;;  %320 = vadd.xlane.f32.xlu0 %v319_v6 }
  0x1b   : > { %s1479_s27 = scalar_lea.vmem %s1478_s25, 256  ;;  %p1480_p1 = scmp.lt.s32.totalorder %s1119_s13, %s1478_s25 }
  0x1c   : > { %s1368_s12 = sshll.u32 %s1683_s11, 3 }
  0x1d   : > { %s272_s15 = scalar_lea.vmem %s2329_s0, %s1368_s12  ;;  %s2248_s12 = scalar_lea.hbm %s2322_s3, %s1369_s8 }
  0x1e   : > { %v1691_v7 = vld [vmem:[%s272_s15] sm:$0xff]  ;;  %s1473_s15 = scalar_lea.vmem %s1119_s13, 128 }
  0x1f   : > { %v432_v8 = vmul.f32 2.0, %v1691_v7  ;;  %v413_v24 = vmul.f32 %v1691_v7, %v1691_v7  ;;  %p1474_p12 = scmp.ne.s32.totalorder %s1119_s13, %s1473_s15  ;;  %p1481_p2 = scmp.lt.s32.totalorder %s1479_s27, %s1473_s15 }
  0x21   : > { %v434_v9 = vcombine.high %v432_v8, %v432_v8  ;;  %v415_v25 = vcombine.high %v413_v24, %v413_v24  ;;  %v418_v26 = vsel %vm2325_vm1, %v413_v24, 0.0  ;;  %p1475_p13 = pnand %p1474_p12, %p1660_p4  ;;  %p1482_p3 = por %p1481_p2, %p1480_p1 }
  0x22   : > { %v419_v28 = vrot.slane %v418_v26, 4 }
  0x23   : > { %1278 = vmatprep.subr.msk.mxu0 %vm2325_vm1, %v434_v9  ;;  %v425_v27 = vsel %vm2325_vm1, %v415_v25, 0.0  ;;  %p1476_p0 = pneg %p1475_p13 }
  0x24   : > { %1279 = vmatpush1.msk.msra.mxu0 %vm2325_vm1, %v432_v8  ;;  %v426_v29 = vrot.slane %v425_v27, 4  ;;  %v420_v30 = vadd.f32 %v419_v28, %v418_v26 }
  0x25   : > { %1280 = vmatmul.mubr.msk.f32.vlgmr.msra.gmra.mrb[0].mxu0 %vm315_vm0, %v282_v0  ;;  %p1483_p5 = pnand %p1482_p3, %p1476_p0 }
  0x26   : > { %557 = vmatprep.mubr.f32.mxu0 %v1585_v2  ;;  %v427_v31 = vadd.f32 %v426_v29, %v425_v27  ;;  %v421_v32 = vrot.slane %v420_v30, 2 }
  0x28   : > { %v428_v33 = vrot.slane %v427_v31, 2  ;;  %v422_v34 = vadd.f32 %v421_v32, %v420_v30 }
  0x29   : > { %1281 = vmatmul.mubr.msk.f32.gmra.mrb[2].mxu0 %vm315_vm0, %v283_v1 }
  0x2a   : > { %563 = vmatprep.mubr.f32.mxu0 %v1585_v2  ;;  %v429_v35 = vadd.f32 %v428_v33, %v427_v31  ;;  %v423_v36 = vrot.slane %v422_v34, 1 }
  0x2c   : > { %v430_v37 = vrot.slane %v429_v35, 1  ;;  %v1758_v40 = vadd.f32 %v423_v36, %v422_v34 }
  0x2d   : > { %1282 = vmatmul.mubr.msk.f32.gmra.mrb[4].mxu0 %vm315_vm0, %v284_v10 }
  0x2e   : > { %569 = vmatprep.mubr.f32.mxu0 %v1585_v2  ;;  %v1760_v41 = vadd.f32 %v430_v37, %v429_v35 }
  0x31   : > { %1283 = vmatmul.mubr.msk.f32.gmra.mrb[6].mxu0 %vm315_vm0, %v285_v11 }
  0x32   : > { %575 = vmatprep.mubr.f32.mxu0 %v1585_v2 }
  0x35   : > { %1284 = vmatmul.mubr.msk.f32.gmra.mrb[8].mxu0 %vm315_vm0, %v286_v12 }
  0x36   : > { %581 = vmatprep.mubr.f32.mxu0 %v1585_v2 }
  0x39   : > { %1285 = vmatmul.mubr.msk.f32.gmra.mrb[10].mxu0 %vm315_vm0, %v287_v13 }
  0x3a   : > { %587 = vmatprep.mubr.f32.mxu0 %v1585_v2 }
  0x3d   : > { %1286 = vmatmul.mubr.msk.f32.gmra.mrb[12].mxu0 %vm315_vm0, %v288_v14 }
  0x3e   : > { %593 = vmatprep.mubr.f32.mxu0 %v1585_v2 }
  0x41   : > { %1287 = vmatmul.mubr.msk.f32.gmra.mrb[14].mxu0 %vm315_vm0, %v289_v15 }
  0x42   : > { %599 = vmatprep.mubr.f32.mxu0 %v1585_v2 }
  0x45   : > { %1288 = vmatmul.mubr.msk.f32.gmra.mrb[16].mxu0 %vm315_vm0, %v290_v16 }
  0x46   : > { %605 = vmatprep.mubr.f32.mxu0 %v1585_v2 }
  0x49   : > { %1289 = vmatmul.mubr.msk.f32.gmra.mrb[18].mxu0 %vm315_vm0, %v291_v17 }
  0x4a   : > { %611 = vmatprep.mubr.f32.mxu0 %v1585_v2 }
  0x4d   : > { %1290 = vmatmul.mubr.msk.f32.gmra.mrb[20].mxu0 %vm315_vm0, %v292_v18 }
  0x4e   : > { %617 = vmatprep.mubr.f32.mxu0 %v1585_v2 }
  0x51   : > { %1291 = vmatmul.mubr.msk.f32.gmra.mrb[22].mxu0 %vm315_vm0, %v293_v19 }
  0x52   : > { %623 = vmatprep.mubr.f32.mxu0 %v1585_v2 }
  0x55   : > { %1292 = vmatmul.mubr.msk.f32.gmra.mrb[24].mxu0 %vm315_vm0, %v294_v20 }
  0x56   : > { %629 = vmatprep.mubr.f32.mxu0 %v1585_v2 }
  0x59   : > { %1293 = vmatmul.mubr.msk.f32.gmra.mrb[26].mxu0 %vm315_vm0, %v295_v21 }
  0x5a   : > { %635 = vmatprep.mubr.f32.mxu0 %v1585_v2 }
  0x5d   : > { %1294 = vmatmul.mubr.msk.f32.gmra.mrb[28].mxu0 %vm315_vm0, %v296_v22 }
  0x5e   : > { %641 = vmatprep.mubr.f32.mxu0 %v1585_v2 }
  0x61   : > { %1295 = vmatmul.mubr.msk.f32.gmra.mrb[30].mxu0 %vm315_vm0, %v297_v23 }
  0xa3   : > { %v318_v44 = vpop.xlane.xlu0 %317 }
  0xa7   : > { %v321_v56 = vpop.xlane.xlu0 %320 }
  0xf8   : > { %v553_v38 = vpop.f32.mrb[0].mxu0 }
  0xf9   : > { %v555_v39 = vpop.f32.mrb[1].mxu0  ;;  %v648_v45 = vsub.f32 %v1758_v40, %v553_v38 }
  0xfa   : > { %v649_v46 = vsub.f32 %v1760_v41, %v555_v39 }
  0xfb   : > { %v1766_v51 = vadd.f32 %v648_v45, %v318_v44 }
  0xfc   : > { %v559_v42 = vpop.f32.mrb[2].mxu0  ;;  %v1771_v54 = vadd.f32 %v649_v46, %v318_v44 }
  0xfd   : > { %v561_v43 = vpop.f32.mrb[3].mxu0  ;;  %v650_v52 = vsub.f32 %v1758_v40, %v559_v42 }
  0xfe   : > { %v651_v55 = vsub.f32 %v1760_v41, %v561_v43 }
  0xff   : > { %v1782_v0 = vadd.f32 %v650_v52, %v321_v56 }
 0x100   : > { %v565_v47 = vpop.f32.mrb[4].mxu0  ;;  %v1786_v2 = vadd.f32 %v651_v55, %v321_v56 }
 0x101   : > { %v652_v48 = vsub.f32 %v1758_v40, %v565_v47  ;;  %v567_v49 = vpop.f32.mrb[5].mxu0 }
 0x102   : > { %v653_v50 = vsub.f32 %v1760_v41, %v567_v49 }
 0x103   : > { %v1769_v53 = vadd.f32 inf, %v652_v48 }
 0x104   : > { %v1774_v57 = vadd.f32 inf, %v653_v50  ;;  %v571_v58 = vpop.f32.mrb[6].mxu0 }
 0x105   : > { %v712_v59 = vmin.f32 %v1766_v51, %v1769_v53  ;;  %v654_v60 = vsub.f32 %v1758_v40, %v571_v58  ;;  %v573_v61 = vpop.f32.mrb[7].mxu0 }
 0x106   : > { %v733_v62 = vmin.f32 %v1771_v54, %v1774_v57  ;;  %v655_v63 = vsub.f32 %v1760_v41, %v573_v61 }
 0x107   : > { %v1784_v1 = vadd.f32 inf, %v654_v60 }
 0x108   : > { %v1788_v3 = vadd.f32 inf, %v655_v63  ;;  %v577_v4 = vpop.f32.mrb[8].mxu0 }
 0x109   : > { %v713_v5 = vmin.f32 %v1782_v0, %v1784_v1  ;;  %v656_v6 = vsub.f32 %v1758_v40, %v577_v4  ;;  %v579_v8 = vpop.f32.mrb[9].mxu0 }
 0x10a   : > { %v734_v9 = vmin.f32 %v1786_v2, %v1788_v3  ;;  %v657_v10 = vsub.f32 %v1760_v41, %v579_v8 }
 0x10b   : > { %v1796_v11 = vadd.f32 inf, %v656_v6 }
 0x10c   : > { %v1798_v12 = vadd.f32 inf, %v657_v10  ;;  %v583_v13 = vpop.f32.mrb[10].mxu0 }
 0x10d   : > { %v714_v14 = vmin.f32 %v712_v59, %v1796_v11  ;;  %v658_v15 = vsub.f32 %v1758_v40, %v583_v13  ;;  %v585_v16 = vpop.f32.mrb[11].mxu0 }
 0x10e   : > { %v735_v17 = vmin.f32 %v733_v62, %v1798_v12  ;;  %v659_v18 = vsub.f32 %v1760_v41, %v585_v16 }
 0x10f   : > { %v1804_v19 = vadd.f32 inf, %v658_v15 }
 0x110   : > { %v1806_v20 = vadd.f32 inf, %v659_v18  ;;  %v589_v21 = vpop.f32.mrb[12].mxu0 }
 0x111   : > { %v715_v22 = vmin.f32 %v713_v5, %v1804_v19  ;;  %v660_v23 = vsub.f32 %v1758_v40, %v589_v21  ;;  %v591_v24 = vpop.f32.mrb[13].mxu0 }
 0x112   : > { %v736_v25 = vmin.f32 %v734_v9, %v1806_v20  ;;  %v661_v26 = vsub.f32 %v1760_v41, %v591_v24 }
 0x113   : > { %v1812_v27 = vadd.f32 inf, %v660_v23 }
 0x114   : > { %v1814_v28 = vadd.f32 inf, %v661_v26  ;;  %v595_v29 = vpop.f32.mrb[14].mxu0 }
 0x115   : > { %v716_v30 = vmin.f32 %v714_v14, %v1812_v27  ;;  %v662_v31 = vsub.f32 %v1758_v40, %v595_v29  ;;  %v597_v32 = vpop.f32.mrb[15].mxu0 }
 0x116   : > { %v737_v33 = vmin.f32 %v735_v17, %v1814_v28  ;;  %v663_v34 = vsub.f32 %v1760_v41, %v597_v32 }
 0x117   : > { %v1820_v35 = vadd.f32 inf, %v662_v31 }
 0x118   : > { %v1822_v36 = vadd.f32 inf, %v663_v34  ;;  %v601_v37 = vpop.f32.mrb[16].mxu0 }
 0x119   : > { %v717_v38 = vmin.f32 %v715_v22, %v1820_v35  ;;  %v664_v39 = vsub.f32 %v1758_v40, %v601_v37  ;;  %v603_v42 = vpop.f32.mrb[17].mxu0 }
 0x11a   : > { %v738_v43 = vmin.f32 %v736_v25, %v1822_v36  ;;  %v665_v44 = vsub.f32 %v1760_v41, %v603_v42 }
 0x11b   : > { %v1828_v45 = vadd.f32 inf, %v664_v39 }
 0x11c   : > { %v1830_v46 = vadd.f32 inf, %v665_v44  ;;  %v607_v47 = vpop.f32.mrb[18].mxu0 }
 0x11d   : > { %v718_v48 = vmin.f32 %v716_v30, %v1828_v45  ;;  %v666_v49 = vsub.f32 %v1758_v40, %v607_v47  ;;  %v609_v50 = vpop.f32.mrb[19].mxu0 }
 0x11e   : > { %v739_v52 = vmin.f32 %v737_v33, %v1830_v46  ;;  %v667_v55 = vsub.f32 %v1760_v41, %v609_v50 }
 0x11f   : > { %v1836_v56 = vadd.f32 inf, %v666_v49 }
 0x120   : > { %v1838_v58 = vadd.f32 inf, %v667_v55  ;;  %v613_v59 = vpop.f32.mrb[20].mxu0 }
 0x121   : > { %v719_v60 = vmin.f32 %v717_v38, %v1836_v56  ;;  %v668_v61 = vsub.f32 %v1758_v40, %v613_v59  ;;  %v615_v62 = vpop.f32.mrb[21].mxu0 }
 0x122   : > { %v740_v63 = vmin.f32 %v738_v43, %v1838_v58  ;;  %v669_v4 = vsub.f32 %v1760_v41, %v615_v62 }
 0x123   : > { %v1844_v5 = vadd.f32 inf, %v668_v61 }
 0x124   : > { %v1846_v6 = vadd.f32 inf, %v669_v4  ;;  %v619_v8 = vpop.f32.mrb[22].mxu0 }
 0x125   : > { %v720_v9 = vmin.f32 %v718_v48, %v1844_v5  ;;  %v670_v10 = vsub.f32 %v1758_v40, %v619_v8  ;;  %v621_v13 = vpop.f32.mrb[23].mxu0 }
 0x126   : > { %v741_v14 = vmin.f32 %v739_v52, %v1846_v6  ;;  %v671_v15 = vsub.f32 %v1760_v41, %v621_v13 }
 0x127   : > { %v1852_v16 = vadd.f32 inf, %v670_v10  ;;  %v364_v10 = vlaneseq }
 0x128   : > { %v1854_v17 = vadd.f32 inf, %v671_v15  ;;  %v625_v18 = vpop.f32.mrb[24].mxu0 }
 0x129   : > { %v721_v21 = vmin.f32 %v719_v60, %v1852_v16  ;;  %v672_v22 = vsub.f32 %v1758_v40, %v625_v18  ;;  %v627_v23 = vpop.f32.mrb[25].mxu0 }
 0x12a   : > { %v742_v24 = vmin.f32 %v740_v63, %v1854_v17  ;;  %v673_v25 = vsub.f32 %v1760_v41, %v627_v23 }
 0x12b   : > { %v1860_v26 = vadd.f32 inf, %v672_v22 }
 0x12c   : > { %v1862_v29 = vadd.f32 inf, %v673_v25  ;;  %v631_v30 = vpop.f32.mrb[26].mxu0 }
 0x12d   : > { %v722_v31 = vmin.f32 %v720_v9, %v1860_v26  ;;  %v674_v32 = vsub.f32 %v1758_v40, %v631_v30  ;;  %v633_v33 = vpop.f32.mrb[27].mxu0 }
 0x12e   : > { %v743_v34 = vmin.f32 %v741_v14, %v1862_v29  ;;  %v675_v37 = vsub.f32 %v1760_v41, %v633_v33 }
 0x12f   : > { %v1868_v38 = vadd.f32 inf, %v674_v32 }
 0x130   : > { %v1870_v39 = vadd.f32 inf, %v675_v37  ;;  %v637_v42 = vpop.f32.mrb[28].mxu0 }
 0x131   : > { %v723_v43 = vmin.f32 %v721_v21, %v1868_v38  ;;  %v676_v44 = vsub.f32 %v1758_v40, %v637_v42  ;;  %v639_v47 = vpop.f32.mrb[29].mxu0  ;;  %v1891_v21 = vshrl.u32 %v364_v10, 7 }
 0x132   : > { %v744_v48 = vmin.f32 %v742_v24, %v1870_v39  ;;  %v677_v49 = vsub.f32 %v1760_v41, %v639_v47 }
 0x133   : > { %v1876_v50 = vadd.f32 inf, %v676_v44  ;;  %v367_v25 = vadd.s32 16, %v1891_v21  ;;  %v368_v30 = vadd.s32 24, %v1891_v21  ;;  %v369_v32 = vadd.s32 32, %v1891_v21 }
 0x134   : > { %v1878_v52 = vadd.f32 inf, %v677_v49  ;;  %v643_v55 = vpop.f32.mrb[30].mxu0  ;;  %v370_v33 = vadd.s32 40, %v1891_v21  ;;  %v372_v42 = vadd.s32 56, %v1891_v21  ;;  %v374_v44 = vadd.s32 72, %v1891_v21 }
 0x135   : > { %v724_v59 = vmin.f32 %v722_v31, %v1876_v50  ;;  %v678_v60 = vsub.f32 %v1758_v40, %v643_v55  ;;  %v645_v61 = vpop.f32.mrb[31].mxu0  ;;  %v376_v49 = vadd.s32 88, %v1891_v21  ;;  %v377_v55 = vadd.s32 96, %v1891_v21 }
 0x136   : > { %v745_v62 = vmin.f32 %v743_v34, %v1878_v52  ;;  %v679_v63 = vsub.f32 %v1760_v41, %v645_v61  ;;  %v366_v41 = vadd.s32 8, %v1891_v21  ;;  %v371_v34 = vadd.s32 48, %v1891_v21 }
 0x137   : > { %v1884_v4 = vadd.f32 inf, %v678_v60  ;;  %v378_v60 = vadd.s32 104, %v1891_v21  ;;  %v1907_v61 = vadd.s32 112, %v1891_v21 }
 0x138   : > { %v1886_v8 = vadd.f32 inf, %v679_v63  ;;  %v1912_v63 = vcvt.s32.f32 %v366_v41 }
 0x139   : > { %v725_v9 = vmin.f32 %v723_v43, %v1884_v4  ;;  %v373_v43 = vadd.s32 64, %v1891_v21 }
 0x13a   : > { %v746_v13 = vmin.f32 %v744_v48, %v1886_v8  ;;  %v375_v48 = vadd.s32 80, %v1891_v21 }
 0x13b   : > { %v726_v14 = vmin.f32 %v724_v59, %v725_v9  ;;  %v1961_v41 = vcvt.s32.f32 %v373_v43  ;;  %v1989_v43 = vcvt.s32.f32 %v378_v60 }
 0x13c   : > { %v747_v15 = vmin.f32 %v745_v62, %v746_v13  ;;  %v1910_v62 = vcvt.s32.f32 %v1891_v21  ;;  %v1916_v13 = vcvt.s32.f32 %v367_v25  ;;  %v1963_v25 = vcvt.s32.f32 %v374_v44 }
 0x13d   : > { %v727_v18 = vrot.slane %v726_v14, 4 }
 0x13e   : > { %v748_v40 = vrot.slane %v747_v15, 4 }
 0x13f   : > { %v728_v22 = vmin.f32 %v726_v14, %v727_v18  ;;  %v1918_v14 = vcvt.s32.f32 %v368_v30  ;;  %v1922_v18 = vcvt.s32.f32 %v370_v33 }
 0x140   : > { %v749_v23 = vmin.f32 %v747_v15, %v748_v40  ;;  %v1920_v15 = vcvt.s32.f32 %v369_v32  ;;  %v1924_v40 = vcvt.s32.f32 %v371_v34 }
 0x141   : > { %v729_v24 = vrot.slane %v728_v22, 2 }
 0x142   : > { %v750_v31 = vrot.slane %v749_v23, 2 }
 0x143   : > { %v730_v37 = vmin.f32 %v728_v22, %v729_v24  ;;  %v1926_v22 = vcvt.s32.f32 %v372_v42  ;;  %v380_v24 = vadd.s32 120, %v1891_v21  ;;  %v1985_v42 = vcvt.s32.f32 %v376_v49 }
 0x144   : > { %v751_v47 = vmin.f32 %v749_v23, %v750_v31 }
 0x145   : > { %v731_v59 = vrot.slane %v730_v37, 1  ;;  %v2050_v60 = vcvt.s32.f32 %v380_v24 }
 0x146   : > { %v752_v23 = vrot.slane %v751_v47, 1 }
 0x147   : > { %v1914_v9 = vmin.f32 %v730_v37, %v731_v59  ;;  %v1983_v37 = vcvt.s32.f32 %v375_v48  ;;  %v2048_v59 = vcvt.s32.f32 %v1907_v61 }
 0x148   : > { %v1965_v30 = vmin.f32 %v751_v47, %v752_v23 }
 0x149   : > { %vm770_vm2 = vcmp.eq.f32.partialorder %v1766_v51, %v1914_v9  ;;  %vm772_vm3 = vcmp.eq.f32.partialorder %v1782_v0, %v1914_v9  ;;  %vm774_vm4 = vcmp.eq.f32.partialorder %v1769_v53, %v1914_v9  ;;  %vm776_vm5 = vcmp.eq.f32.partialorder %v1784_v1, %v1914_v9 }
 0x14a   : > { %vm778_vm6 = vcmp.eq.f32.partialorder %v1796_v11, %v1914_v9  ;;  %vm780_vm7 = vcmp.eq.f32.partialorder %v1804_v19, %v1914_v9  ;;  %vm782_vm8 = vcmp.eq.f32.partialorder %v1812_v27, %v1914_v9  ;;  %vm784_vm9 = vcmp.eq.f32.partialorder %v1820_v35, %v1914_v9 }
 0x14b   : > { %vm786_vm10 = vcmp.eq.f32.partialorder %v1828_v45, %v1914_v9  ;;  %vm788_vm11 = vcmp.eq.f32.partialorder %v1836_v56, %v1914_v9  ;;  %vm790_vm12 = vcmp.eq.f32.partialorder %v1844_v5, %v1914_v9  ;;  %vm792_vm13 = vcmp.eq.f32.partialorder %v1852_v16, %v1914_v9 }
 0x14c   : > { %vm794_vm14 = vcmp.eq.f32.partialorder %v1860_v26, %v1914_v9  ;;  %vm796_vm15 = vcmp.eq.f32.partialorder %v1868_v38, %v1914_v9  ;;  %v802_v31 = vsel %vm770_vm2, %v1910_v62, 128.0  ;;  %v804_v32 = vsel %vm772_vm3, %v1912_v63, 128.0 }
 0x14d   : > { %v806_v33 = vsel %vm774_vm4, %v1916_v13, 128.0  ;;  %v808_v34 = vsel %vm776_vm5, %v1918_v14, 128.0  ;;  %v1987_v51 = vcvt.s32.f32 %v377_v55  ;;  %v810_v0 = vsel %vm778_vm6, %v1920_v15, 128.0 }
 0x14e   : > { %v812_v53 = vsel %vm780_vm7, %v1922_v18, 128.0  ;;  %v814_v1 = vsel %vm782_vm8, %v1924_v40, 128.0  ;;  %v816_v44 = vsel %vm784_vm9, %v1926_v22, 128.0  ;;  %v834_v47 = vmin.f32 %v802_v31, %v806_v33 }
 0x14f   : > { %v835_v48 = vmin.f32 %v804_v32, %v808_v34  ;;  %vm771_vm2 = vcmp.eq.f32.partialorder %v1771_v54, %v1965_v30  ;;  %vm773_vm3 = vcmp.eq.f32.partialorder %v1786_v2, %v1965_v30  ;;  %vm775_vm4 = vcmp.eq.f32.partialorder %v1774_v57, %v1965_v30 }
 0x150   : > { %vm777_vm5 = vcmp.eq.f32.partialorder %v1788_v3, %v1965_v30  ;;  %v836_v11 = vmin.f32 %v834_v47, %v810_v0  ;;  %vm787_vm1 = vcmp.eq.f32.partialorder %v1830_v46, %v1965_v30  ;;  %vm789_vm0 = vcmp.eq.f32.partialorder %v1838_v58, %v1965_v30 }
 0x151   : > { %v837_v19 = vmin.f32 %v835_v48, %v812_v53  ;;  %vm795_vm8 = vcmp.eq.f32.partialorder %v1862_v29, %v1965_v30  ;;  %vm797_vm9 = vcmp.eq.f32.partialorder %v1870_v39, %v1965_v30  ;;  %v818_v49 = vsel %vm786_vm10, %v1961_v41, 128.0 }
 0x152   : > { %v838_v27 = vmin.f32 %v836_v11, %v814_v1  ;;  %v820_v55 = vsel %vm788_vm11, %v1963_v25, 128.0  ;;  %vm799_vm7 = vcmp.eq.f32.partialorder %v1878_v52, %v1965_v30  ;;  %vm801_vm6 = vcmp.eq.f32.partialorder %v1886_v8, %v1965_v30 }
 0x153   : > { %v839_v35 = vmin.f32 %v837_v19, %v816_v44  ;;  %v822_v45 = vsel %vm790_vm12, %v1983_v37, 128.0  ;;  %v824_v56 = vsel %vm792_vm13, %v1985_v42, 128.0  ;;  %v803_v61 = vsel %vm771_vm2, %v1910_v62, 128.0 }
 0x154   : > { %v840_v23 = vmin.f32 %v838_v27, %v818_v49  ;;  %v805_v24 = vsel %vm773_vm3, %v1912_v63, 128.0  ;;  %v807_v5 = vsel %vm775_vm4, %v1916_v13, 128.0  ;;  %v809_v16 = vsel %vm777_vm5, %v1918_v14, 128.0 }
 0x155   : > { %v841_v31 = vmin.f32 %v839_v35, %v820_v55  ;;  %v826_v54 = vsel %vm794_vm14, %v1987_v51, 128.0  ;;  %v828_v2 = vsel %vm796_vm15, %v1989_v43, 128.0  ;;  %vm2330_vm10 = vcmp.eq.f32.partialorder %v1876_v50, %v1914_v9 }
 0x156   : > { %v842_v32 = vmin.f32 %v840_v23, %v822_v45  ;;  %v830_v57 = vsel %vm2330_vm10, %v2048_v59, 128.0  ;;  %vm2331_vm11 = vcmp.eq.f32.partialorder %v1884_v4, %v1914_v9  ;;  %v855_v53 = vmin.f32 %v803_v61, %v807_v5 }
 0x157   : > { %v843_v33 = vmin.f32 %v841_v31, %v824_v56  ;;  %v832_v3 = vsel %vm2331_vm11, %v2050_v60, 128.0  ;;  %v856_v26 = vmin.f32 %v805_v24, %v809_v16  ;;  %vm2332_vm12 = vcmp.eq.f32.partialorder %v1798_v12, %v1965_v30 }
 0x158   : > { %v844_v34 = vmin.f32 %v842_v32, %v826_v54  ;;  %v811_v38 = vsel %vm2332_vm12, %v1920_v15, 128.0  ;;  %vm2333_vm13 = vcmp.eq.f32.partialorder %v1806_v20, %v1965_v30  ;;  %vm2334_vm14 = vcmp.eq.f32.partialorder %v1814_v28, %v1965_v30 }
 0x159   : > { %v845_v0 = vmin.f32 %v843_v33, %v828_v2  ;;  %v813_v50 = vsel %vm2333_vm13, %v1922_v18, 128.0  ;;  %v857_v47 = vmin.f32 %v855_v53, %v811_v38  ;;  %v815_v4 = vsel %vm2334_vm14, %v1924_v40, 128.0 }
 0x15a   : > { %v846_v1 = vmin.f32 %v844_v34, %v830_v57  ;;  %v858_v48 = vmin.f32 %v856_v26, %v813_v50  ;;  %vm2335_vm15 = vcmp.eq.f32.partialorder %v1822_v36, %v1965_v30  ;;  %v819_v20 = vsel %vm787_vm1, %v1961_v41, 128.0 }
 0x15b   : > { %v847_v44 = vmin.f32 %v845_v0, %v832_v3  ;;  %v817_v9 = vsel %vm2335_vm15, %v1926_v22, 128.0  ;;  %v859_v12 = vmin.f32 %v857_v47, %v815_v4  ;;  %v821_v35 = vsel %vm789_vm0, %v1963_v25, 128.0 }
 0x15c   : > { %v860_v19 = vmin.f32 %v858_v48, %v817_v9  ;;  %vm2336_vm2 = vcmp.eq.f32.partialorder %v1846_v6, %v1965_v30  ;;  %vm2337_vm3 = vcmp.eq.f32.partialorder %v1854_v17, %v1965_v30  ;;  %v827_v58 = vsel %vm795_vm8, %v1987_v51, 128.0 }
 0x15d   : > { %v848_v11 = vmin.f32 %v846_v1, %v847_v44  ;;  %v861_v28 = vmin.f32 %v859_v12, %v819_v20  ;;  %v823_v36 = vsel %vm2336_vm2, %v1983_v37, 128.0  ;;  %v825_v23 = vsel %vm2337_vm3, %v1985_v42, 128.0 }
 0x15e   : > { %v862_v49 = vmin.f32 %v860_v19, %v821_v35  ;;  %v829_v45 = vsel %vm797_vm9, %v1989_v43, 128.0  ;;  %v831_v17 = vsel %vm799_vm7, %v2048_v59, 128.0  ;;  %v833_v24 = vsel %vm801_vm6, %v2050_v60, 128.0 }
 0x15f   : > { %v849_v27 = vrot.slane %v848_v11, 4  ;;  %v863_v46 = vmin.f32 %v861_v28, %v823_v36  ;;  %v1586_v52 = vmov 1966171168   ;;  %v1587_v30 = vmov 1.0|1.0  }
 0x160   : > { %v864_v31 = vmin.f32 %v862_v49, %v825_v23  ;;  %v1052_v53 = vunpack.c.l.s4 %v1586_v52 }
 0x161   : > { %v850_v55 = vmin.f32 %v848_v11, %v849_v27  ;;  %v865_v56 = vmin.f32 %v863_v46, %v827_v58 }
 0x162   : > { %v866_v6 = vmin.f32 %v864_v31, %v829_v45  ;;  %v1053_v26 = vunpack.c.0.s8 %v1052_v53 }
 0x163   : > { %v851_v61 = vrot.slane %v850_v55, 2  ;;  %v867_v29 = vmin.f32 %v865_v56, %v831_v17 }
 0x164   : > { %v868_v32 = vmin.f32 %v866_v6, %v833_v24 }
 0x165   : > { %v852_v5 = vmin.f32 %v850_v55, %v851_v61 }
 0x166   : > { %v869_v33 = vmin.f32 %v867_v29, %v868_v32 }
 0x167   : > { %v853_v54 = vrot.slane %v852_v5, 1 }
 0x168   : > { %v870_v16 = vrot.slane %v869_v33, 4 }
 0x169   : > { %v2140_v0 = vmin.f32 %v852_v5, %v853_v54 }
 0x16a   : > { %v871_v39 = vmin.f32 %v869_v33, %v870_v16 }
 0x16b   : > { %vm876_vm1 = vcmp.eq.f32.partialorder %v1910_v62, %v2140_v0  ;;  %vm878_vm0 = vcmp.eq.f32.partialorder %v1912_v63, %v2140_v0  ;;  %v1403_v8 = vtrunc.f32 %v2140_v0  ;;  %vm880_vm11 = vcmp.eq.f32.partialorder %v1916_v13, %v2140_v0 }
 0x16c   : > { %v872_v2 = vrot.slane %v871_v39, 2  ;;  %vm1373_vm9 = vmpackc.low %vm878_vm0, %vm876_vm1  ;;  %vm882_vm12 = vcmp.eq.f32.partialorder %v1918_v14, %v2140_v0  ;;  %vm884_vm3 = vcmp.eq.f32.partialorder %v1920_v15, %v2140_v0  ;;  %vm886_vm1 = vcmp.eq.f32.partialorder %v1922_v18, %v2140_v0 }
 0x16d   : > { %vm1377_vm15 = vmpackc.low %vm882_vm12, %vm880_vm11 }
 0x16e   : > { %v873_v34 = vmin.f32 %v871_v39, %v872_v2 }
 0x170   : > { %v874_v57 = vrot.slane %v873_v34, 1 }
 0x172   : > { %v2142_v3 = vmin.f32 %v873_v34, %v874_v57 }
 0x174   : > { %vm877_vm4 = vcmp.eq.f32.partialorder %v1910_v62, %v2142_v3  ;;  %vm879_vm5 = vcmp.eq.f32.partialorder %v1912_v63, %v2142_v3  ;;  %vm881_vm6 = vcmp.eq.f32.partialorder %v1916_v13, %v2142_v3  ;;  %vm883_vm7 = vcmp.eq.f32.partialorder %v1918_v14, %v2142_v3 }
 0x175   : > { %vm1371_vm8 = vmpackc.low %vm879_vm5, %vm877_vm4  ;;  %vm885_vm13 = vcmp.eq.f32.partialorder %v1920_v15, %v2142_v3  ;;  %vm887_vm14 = vcmp.eq.f32.partialorder %v1922_v18, %v2142_v3  ;;  %v1404_v62 = vcvt.f32.s32 %v1403_v8  ;;  %v1405_v63 = vtrunc.f32 %v2142_v3 }
 0x176   : > { %1372 = vmatprep.subr.msk.bf16.mxu1 %vm1371_vm8, %v1587_v30  ;;  %vm1375_vm10 = vmpackc.low %vm883_vm7, %vm881_vm6  ;;  %v1056_v13 = vsub.s32 %v1053_v26, %v1891_v21  ;;  %vm889_vm0 = vcmp.eq.f32.partialorder %v1924_v40, %v2142_v3  ;;  %vm891_vm4 = vcmp.eq.f32.partialorder %v1926_v22, %v2142_v3  ;;  %vm888_vm7 = vcmp.eq.f32.partialorder %v1924_v40, %v2140_v0 }
 0x177   : > { %1374 = vmatpush1.bf16.msk.msra.mxu1 %vm1373_vm9, %v1587_v30  ;;  %v1406_v1 = vcvt.f32.s32 %v1405_v63  ;;  %vm1379_vm2 = vmpackc.low %vm887_vm14, %vm885_vm13  ;;  %vm890_vm8 = vcmp.eq.f32.partialorder %v1926_v22, %v2140_v0  ;;  %vm1067_vm9 = vcmp.lt.s32.totalorder %v364_v10, 256  ;;  %vm895_vm11 = vcmp.eq.f32.partialorder %v1963_v25, %v2142_v3  ;;  %v298_v10 = vld [vmem:[%s2321_s2] sm:$0xf] }
 0x178   : > { %1376 = vmatprep.subr.msk.bf16.mxu1 %vm1375_vm10, %v1587_v30  ;;  %vm1381_vm5 = vmpackc.low %vm886_vm1, %vm884_vm3  ;;  %vm893_vm10 = vcmp.eq.f32.partialorder %v1961_v41, %v2142_v3  ;;  %vm892_vm14 = vcmp.eq.f32.partialorder %v1961_v41, %v2140_v0  ;;  %vm899_vm3 = vcmp.eq.f32.partialorder %v1985_v42, %v2142_v3  ;;  %v1071_v18 = vcombine.high %v1691_v7, %v1691_v7 }
 0x179   : > { %v1050_v14 = vcombine.low %v1404_v62, %v1406_v1  ;;  %vm1383_vm6 = vmpackc.low %vm891_vm4, %vm889_vm0  ;;  %vm896_vm4 = vcmp.eq.f32.partialorder %v1983_v37, %v2140_v0 }
 0x17a   : > { %vm1385_vm12 = vmpackc.low %vm890_vm8, %vm888_vm7  ;;  %vm903_vm7 = vcmp.eq.f32.partialorder %v1989_v43, %v2142_v3 }
 0x17b   : > { %1378 = vmatpush1.bf16.msk.msra.mxu1 %vm1377_vm15, %v1587_v30  ;;  %v1057_v21 = vrot.slane %v1050_v14, %v1056_v13  ;;  %vm1387_vm13 = vmpackc.low %vm895_vm11, %vm893_vm10  ;;  %vm894_vm15 = vcmp.eq.f32.partialorder %v1963_v25, %v2140_v0  ;;  %vm900_vm10 = vcmp.eq.f32.partialorder %v1987_v51, %v2140_v0  ;;  %vm902_vm11 = vcmp.eq.f32.partialorder %v1989_v43, %v2140_v0 }
 0x17c   : > { %1380 = vmatprep.subr.msk.bf16.mxu1 %vm1379_vm2, %v1587_v30  ;;  %vm897_vm2 = vcmp.eq.f32.partialorder %v1983_v37, %v2142_v3  ;;  %vm1389_vm1 = vmpackc.low %vm894_vm15, %vm892_vm14 }
 0x17d   : > { %v1064_v15 = vrot.slane %v1057_v21, %v1056_v13  ;;  %vm1391_vm0 = vmpackc.low %vm899_vm3, %vm897_vm2  ;;  %vm904_vm2 = vcmp.eq.f32.partialorder %v2048_v59, %v2140_v0  ;;  %vm906_vm3 = vcmp.eq.f32.partialorder %v2050_v60, %v2140_v0 }
 0x17e   : > { %vm1397_vm14 = vmpackc.low %vm902_vm11, %vm900_vm10 }
 0x17f   : > { %1382 = vmatpush1.bf16.msk.msra.mxu1 %vm1381_vm5, %v1587_v30  ;;  %1069 = vst.msk [vmem:[%s2195_s24] sm:$0x3] %vm1067_vm9, %v1064_v15  ;;  %vm898_vm5 = vcmp.eq.f32.partialorder %v1985_v42, %v2140_v0 }
 0x180   : > { %1384 = vmatprep.subr.msk.bf16.mxu1 %vm1383_vm6, %v1587_v30  ;;  %vm901_vm6 = vcmp.eq.f32.partialorder %v1987_v51, %v2142_v3  ;;  %vm1393_vm8 = vmpackc.low %vm898_vm5, %vm896_vm4 }
 0x181   : > { %vm1395_vm9 = vmpackc.low %vm903_vm7, %vm901_vm6 }
 0x183   : > { %1386 = vmatpush1.bf16.msk.msra.mxu1 %vm1385_vm12, %v1587_v30  ;;  %vm905_vm12 = vcmp.eq.f32.partialorder %v2048_v59, %v2142_v3 }
 0x184   : > { %1388 = vmatprep.subr.msk.bf16.mxu1 %vm1387_vm13, %v1587_v30  ;;  %vm907_vm13 = vcmp.eq.f32.partialorder %v2050_v60, %v2142_v3 }
 0x185   : > { %vm1399_vm15 = vmpackc.low %vm907_vm13, %vm905_vm12 }
 0x187   : > { %1390 = vmatpush1.bf16.msk.msra.mxu1 %vm1389_vm1, %v1587_v30  ;;  %vm1401_vm1 = vmpackc.low %vm906_vm3, %vm904_vm2 }
 0x188   : > { %1392 = vmatprep.subr.msk.bf16.mxu1 %vm1391_vm0, %v1587_v30  ;;  %vm2338_vm0 = vcmask 1043456  }
 0x189   : > { %vm2339_vm4 = vmmov %vm2338_vm0 }
 0x18b   : > { %1394 = vmatpush1.bf16.msk.msra.mxu1 %vm1393_vm8, %v1587_v30 }
 0x18c   : > { %1396 = vmatprep.subr.msk.bf16.mxu1 %vm1395_vm9, %v1587_v30 }
 0x18f   : > { %1398 = vmatpush1.bf16.msk.msra.mxu1 %vm1397_vm14, %v1587_v30 }
 0x190   : > { %1400 = vmatprep.subr.msk.bf16.mxu1 %vm1399_vm15, %v1587_v30 }
 0x193   : > { %1402 = vmatpush1.bf16.msk.msra.mxu1 %vm1401_vm1, %v1587_v30 }
 0x196   : > { %1037 = vmatmul.mubr.f32.vlgmr.msra.gmra.mrb[0].mxu1 %v298_v10 }
 0x269   : > { %v1038_v40 = vpop.f32.mrb[0].mxu1 }
 0x26a   : > { %v1073_v22 = vsub.f32 %v1038_v40, %v1691_v7  ;;  %v1040_v41 = vpop.f32.mrb[1].mxu1 }
 0x26b   : > { %v1045_v25 = vcombine.low %v1038_v40, %v1040_v41  ;;  %v1074_v37 = vsub.f32 %v1040_v41, %v1071_v18 }
 0x26c   : > { %v1075_v42 = vmul.f32 %v1073_v22, %v1073_v22 }
 0x26d   : > { %1047 = vst [vmem:[%s250_s7] sm:$0xff] %v1045_v25  ;;  %v1076_v51 = vmul.f32 %v1074_v37, %v1074_v37 }
 0x26e   : > { %v1077_v43 = vsel %vm2338_vm0, %v1075_v42, 0.0 }
 0x26f   : > { %v1078_v59 = vsel %vm2339_vm4, %v1076_v51, 0.0 }
 0x270   : > { %v1079_v60 = vadd.f32 %v1078_v59, %v1077_v43 }
 0x272   : > { %1080 = vadd.xlane.f32.xlu1 %v1079_v60 }
 0x273   : > { %1486 = shalt.err (!%p1483_p5)
}
 0x274   : > { %s1487_s29 = scalar_lea.hbm %s2248_s12, 128  ;;  %s1491_s9 = scalar_lea.hbm %s2322_s3, 256 }
 0x275   : > { %p1488_p6 = scmp.ne.s32.totalorder %s2248_s12, %s1487_s29  ;;  %p1492_p10 = scmp.lt.u32.totalorder %s2248_s12, %s2322_s3 }
 0x276   : > { %p1493_p11 = scmp.lt.u32.totalorder %s1491_s9, %s1487_s29  ;;  %p1495_p13 = scmp.lt.u32.totalorder %s1487_s29, %s2248_s12 }
 0x277   : > { %p1489_p7 = pnand %p1488_p6, %p1660_p4 }
 0x278   : > { %p1494_p12 = por %p1493_p11, %p1492_p10 }
 0x279   : > { %p1490_p9 = pneg %p1489_p7 }
 0x27a   : > { %p1496_p0 = por %p1495_p13, %p1494_p12 }
 0x27c   : > { %p1497_p1 = pnand %p1496_p0, %p1490_p9 }
 0x27e   : > { %1500 = shalt.err (!%p1497_p1)
}
 0x27f   : > { %1409 = dma.vmem_to_hbm [thread:$0]  (%p1660_p4), %s1119_s13, 128, %s2248_s12, %s1093_s14  }
 0x280   : > { %s1370_s15 = sshll.u32 %s1575_s21, 5  ;;  %s1134_s25 = sshll.u32 %s2195_s24, 4  ;;  %s1135_s25 = int_to_ptr.vmem [resolvable:$true] %s1134_s25 }
 0x281   : > { %s2273_s8 = scalar_lea.hbm %s2323_s4, %s1370_s15  ;;  %s1098_s29 = scalar_lea.sflag [#allocation5], %s2170_s16 }
 0x282   : > { %s1501_s9 = scalar_lea.vmem %s1135_s25, 32  ;;  %s1589_s10 = smov [#allocation4]  }
 0x283   : > { %p1502_p2 = scmp.ne.s32.totalorder %s1135_s25, %s1501_s9  ;;  %s1505_s17 = sshll.u32 %s1589_s10, 4  ;;  %s1506_s17 = int_to_ptr.vmem [resolvable:$false] %s1505_s17 }
 0x284   : > { %s1507_s0 = scalar_lea.vmem %s1506_s17, 64  ;;  %p1508_p6 = scmp.lt.s32.totalorder %s1135_s25, %s1506_s17 }
 0x285   : > { %p1503_p3 = pnand %p1502_p2, %p1660_p4  ;;  %p1509_p7 = scmp.lt.s32.totalorder %s1507_s0, %s1501_s9 }
 0x287   : > { %p1504_p5 = pneg %p1503_p3  ;;  %p1510_p9 = por %p1509_p7, %p1508_p6 }
 0x289   : > { %p1511_p10 = pnand %p1510_p9, %p1504_p5 }
 0x28b   : > { %1514 = shalt.err (!%p1511_p10)
}
 0x28c   : > { %s1515_s21 = scalar_lea.hbm %s2273_s8, 32  ;;  %s1519_s12 = scalar_lea.hbm %s2323_s4, 64 }
 0x28d   : > { %p1516_p11 = scmp.ne.s32.totalorder %s2273_s8, %s1515_s21  ;;  %p1520_p0 = scmp.lt.u32.totalorder %s2273_s8, %s2323_s4 }
 0x28e   : > { %p1521_p1 = scmp.lt.u32.totalorder %s1519_s12, %s1515_s21  ;;  %p1523_p3 = scmp.lt.u32.totalorder %s1515_s21, %s2273_s8 }
 0x28f   : > { %p1517_p12 = pnand %p1516_p11, %p1660_p4 }
 0x290   : > { %p1522_p2 = por %p1521_p1, %p1520_p0 }
 0x291   : > { %p1518_p13 = pneg %p1517_p12 }
 0x292   : > { %p1524_p5 = por %p1523_p3, %p1522_p2 }
 0x294   : > { %p1525_p6 = pnand %p1524_p5, %p1518_p13 }
 0x296   : > { %1528 = shalt.err (!%p1525_p6)
}
 0x297   : > { %1410 = dma.vmem_to_hbm [thread:$0]  (%p1660_p4), %s1135_s25, 32, %s2273_s8, %s1098_s29   ;;  %vm1090_vm5 = vcmask 0  }
 0x298   : > { %s279_s27 = scalar_lea.vmem %s2324_s5, %s1683_s11 }
 0x2ff   : > { %v1081_v7 = vpop.xlane.xlu1 %1080 }
 0x300   : > { %v1082_v44 = vrot.slane %v1081_v7, 4 }
 0x302   : > { %v1083_v38 = vadd.f32 %v1082_v44, %v1081_v7 }
 0x304   : > { %v1084_v50 = vrot.slane %v1083_v38, 2 }
 0x306   : > { %v1085_v47 = vadd.f32 %v1084_v50, %v1083_v38 }
 0x308   : > { %v1086_v48 = vrot.slane %v1085_v47, 1 }
 0x30a   : > { %v1087_v11 = vadd.f32 %v1086_v48, %v1085_v47 }
 0x30c   : > { %1407 = vpush %v1087_v11 }
 0x33d   : > { %s1408_s7 = spop %1407 }
 0x33e   : > { %v1089_v4 = vstv %s1408_s7 }
 0x33f   : > { %1091 = vst.msk [vmem:[%s279_s27] sm:$0x1] %vm1090_vm5, %v1089_v4 }
 0x340 PF: > { %p1420_p4 = scmp.ge.s32.totalorder %s1583_s23, 2  ;;  %s1150_s28 = sand.u32 1, %s1563_s18  }
 0x341   : > { %s1151_s25 = scalar_lea.sflag [#allocation3], %s1150_s28 }
 0x342   : > { %p1414_p7 = pnand %p1420_p4, %p1667_p8 }
 0x344   : > { %1554 = dma.done.wait (!%p1414_p7), %s1151_s25, 128  }
 0x345   : > { %1556 = vsyncadd (!%p1414_p7), %s1151_s25, 4294967168  ;;  %s1160_s8 = scalar_lea.sflag [#allocation5], %s1150_s28 }
 0x346   : > { %1558 = dma.done.wait (!%p1414_p7), %s1160_s8, 32  }
 0x347   : > { %1560 = vsyncadd (!%p1414_p7), %s1160_s8, 4294967264  ;;  %s22_s23 = sadd.s32 1, %s1583_s23   ;;  %s2340_s18 = smov %s1567_s19 }
 0x348   : > { %p19_p9 = scmp.ge.s32.totalorder %s22_s23, 4   ;;  %s2341_s19 = smov %s1571_s20 }
 0x349   : > { %s2342_s20 = smov %s1673_s6  ;;  %s2343_s21 = smov %s1579_s22 }
 0x34a   : > { %s2344_s22 = smov %s2346_s26  ;;  %21 = sbr.rel (!%p19_p9) target bundleno = 8 (0x8), region = 96 }
 0x351   :  { %1172 = vsyncpa [#allocation3], 1 }
 0x352   :  { %1174 = vsyncpa [#allocation3 + $0x1], 1 }
 0x353   :  { %1175 = vsyncpa [#allocation5], 1 }
 0x354   :  { %1177 = vsyncpa [#allocation5 + $0x1], 1 }

// kernel: tpu_custom_call.1
= control target key start
LH: loop header
LB: loop body
LE: loop exit
PB: predicated region body
PF: predicated region fallthrough
CT: control target
= control target key end

     0   :  { %s2319_s0 = inlined_call_operand.vmem [shape: f32[2,4,256], index: 0, kind: input, shape index: {}]   ;;  %s2320_s1 = inlined_call_operand.vmem [shape: f32[128,4], index: 1, kind: input, shape index: {}]   ;;  %s2321_s2 = inlined_call_operand.vmem [shape: f32[4,128], index: 2, kind: input, shape index: {}]   ;;  %s2322_s3 = inlined_call_operand.hbm [shape: f32[2,4,256], index: 3, kind: output, shape index: {0}]   ;;  %s2323_s4 = inlined_call_operand.hbm [shape: s32[2,1,256], index: 4, kind: output, shape index: {1}]   ;;  %s2324_s5 = inlined_call_operand.vmem [shape: f32[2,1,1], index: 5, kind: output, shape index: {2}]  }
   0x1   :  { %2326 = sst [smem:[#allocation8_spill]] %s2319_s0 }
   0x2   :  { %11 = vsyncpa [#allocation3], 0 }
   0x3   :  { %13 = vsyncpa [#allocation3 + $0x1], 0 }
   0x4   :  { %14 = vsyncpa [#allocation5], 0 }
   0x5   :  { %16 = vsyncpa [#allocation5 + $0x1], 0  ;;  %s1620_s18 = smov 0   ;;  %s1622_s19 = smov 0  }
   0x6   :  { %s1624_s20 = smov 0   ;;  %s1626_s21 = smov 0  }
   0x7   :  { %s1628_s22 = smov 0   ;;  %s1630_s23 = smov 0  }
   0x8 LB: > { %s1269_s24 = sadd.s32 4294967295, %s1583_s23   ;;  %s1270_s25 = sadd.s32 4294967294, %s1583_s23   ;;  %s1583_s23 = sphi %s1630_s23, %s22_s23   ;;  %s1579_s22 = sphi %s1628_s22, %s2344_s22   ;;  %s1575_s21 = sphi %s1626_s21, %s2343_s21   ;;  %s1571_s20 = sphi %s1624_s20, %s2342_s20   ;;  %s1567_s19 = sphi %s1622_s19, %s2341_s19   ;;  %s1563_s18 = sphi %s1620_s18, %s2340_s18  }
   0x9   : > { %s34_s26 = sadd.s32 1, %s1579_s22  ;;  %s113_s27 = sadd.s32 1, %s1571_s20 }
   0xa   : > { %p36_p0 = scmp.ge.s32.totalorder %s34_s26, 2  ;;  %p123_p1 = scmp.ne.s32.totalorder %s1571_s20, %s1567_s19 }
   0xb   : > { %p124_p2 = scmp.eq.s32.totalorder %s1269_s24, 1  ;;  %p129_p3 = scmp.ne.s32.totalorder %s1567_s19, %s1563_s18 }
   0xc   : > { %s2346_s26 = smov (%p36_p0, %s34_s26), 0  ;;  %p130_p5 = scmp.eq.s32.totalorder %s1270_s25, 1 }
   0xd   : > { %p1660_p4 = por %p124_p2, %p123_p1  ;;  %s108_s29 = ssub.s32 %s1579_s22, %s2346_s26 }
   0xe   : > { %p1273_p6 = scmp.ge.s32.totalorder %s1583_s23, 1  ;;  %p111_p7 = scmp.eq.s32.totalorder %s108_s29, 0 }
   0xf   : > { %p1667_p8 = por %p130_p5, %p129_p3  ;;  %p223_p9 = scmp.lt.s32.totalorder %s1583_s23, 3 }
  0x10   : > { %s1673_s6 = scalar_select %p111_p7, %s1571_s20, %s113_s27  }
  0x11   : > { %p224_p10 = pnand %p1273_p6, %p223_p9 }
  0x12   : > { %p265_p11 = scmp.lt.s32.totalorder (!%p224_p10), %s1575_s21, 1  ;;  %v282_v0 = vld [vmem:[%s2320_s1] sm:$0xff] (!%p224_p10)  ;;  %v283_v1 = vld [vmem:[%s2320_s1 + $0x8] sm:$0xff] (!%p224_p10)  ;;  %v1585_v2 = vmov (!%p224_p10), 0.0   ;;  %vm315_vm0 = vcmask (!%p224_p10), 31744   ;;  %s2329_s0 = sld [smem:[#allocation8_spill]] (!%p224_p10) }
  0x13   : > { %227 = sbr.rel (%p224_p10) target bundleno = 832 (0x340), region = 32  ;;  %551 = vmatprep.mubr.f32.mxu0 (!%p224_p10), %v1585_v2  ;;  %v299_v3 = vmul.f32 (!%p224_p10), %v282_v0, %v282_v0  ;;  %v300_v4 = vmul.f32 (!%p224_p10), %v283_v1, %v283_v1  ;;  %1036 = vmatprep.mubr.f32.mxu1 (!%p224_p10), %v1585_v2  ;;  %vm2325_vm1 = vcmask (!%p224_p10), 1043456   ;;  %v284_v10 = vld [vmem:[%s2320_s1 + $0x10] sm:$0xff] (!%p224_p10)  ;;  %v285_v11 = vld [vmem:[%s2320_s1 + $0x18] sm:$0xff] (!%p224_p10)  ;;  %v286_v12 = vld [vmem:[%s2320_s1 + $0x20] sm:$0xff] (!%p224_p10)  ;;  %s2170_s16 = sand.u32 (!%p224_p10), 1, %s1567_s19  }
  0x14   : > { %v287_v13 = vld [vmem:[%s2320_s1 + $0x28] sm:$0xff] (!%p224_p10)  ;;  %v288_v14 = vld [vmem:[%s2320_s1 + $0x30] sm:$0xff] (!%p224_p10)  ;;  %v289_v15 = vld [vmem:[%s2320_s1 + $0x38] sm:$0xff] (!%p224_p10)  ;;  %s1275_s17 = sshll.u32 (!%p224_p10), %s2170_s16, 1  ;;  %s1274_s29 = sshll.u32 (!%p224_p10), %s2170_s16, 3 }
  0x15   : > { %v316_v5 = vsel (!%p224_p10), %vm315_vm0, %v299_v3, 0.0  ;;  %v319_v6 = vsel (!%p224_p10), %vm315_vm0, %v300_v4, 0.0  ;;  %v290_v16 = vld [vmem:[%s2320_s1 + $0x40] sm:$0xff] (!%p224_p10)  ;;  %v291_v17 = vld [vmem:[%s2320_s1 + $0x48] sm:$0xff] (!%p224_p10)  ;;  %v292_v18 = vld [vmem:[%s2320_s1 + $0x50] sm:$0xff] (!%p224_p10)  ;;  %s2195_s24 = scalar_lea.vmem (!%p224_p10), [#allocation4], %s1275_s17 }
  0x16   : > { %317 = vadd.xlane.f32.xlu0 (!%p224_p10), %v316_v5  ;;  %v293_v19 = vld [vmem:[%s2320_s1 + $0x58] sm:$0xff] (!%p224_p10)  ;;  %v294_v20 = vld [vmem:[%s2320_s1 + $0x60] sm:$0xff] (!%p224_p10)  ;;  %v295_v21 = vld [vmem:[%s2320_s1 + $0x68] sm:$0xff] (!%p224_p10)  ;;  %s250_s7 = scalar_lea.vmem (!%p224_p10), [#allocation2], %s1274_s29  ;;  %s1369_s8 = sshll.u32 (!%p224_p10), %s1575_s21, 7 }
  0x17   : > { %v296_v22 = vld [vmem:[%s2320_s1 + $0x70] sm:$0xff] (!%p224_p10)  ;;  %v297_v23 = vld [vmem:[%s2320_s1 + $0x78] sm:$0xff] (!%p224_p10)  ;;  %s1118_s13 = sshll.u32 (!%p224_p10), %s250_s7, 4  ;;  %s1093_s14 = scalar_lea.sflag (!%p224_p10), [#allocation3], %s2170_s16  ;;  %s1119_s13 = int_to_ptr.vmem [resolvable:$true] %s1118_s13 }
  0x18   : > { %s1588_s17 = smov (!%p224_p10), [#allocation2]  }
  0x19   : > { %s1477_s25 = sshll.u32 (!%p224_p10), %s1588_s17, 4  ;;  %s1478_s25 = int_to_ptr.vmem [resolvable:$false] %s1477_s25 }
  0x1a   : > { %s1683_s11 = scalar_select %p265_p11, %s1575_s21, 1  ;;  %320 = vadd.xlane.f32.xlu0 %v319_v6 }
  0x1b   : > { %s1479_s27 = scalar_lea.vmem %s1478_s25, 256  ;;  %p1480_p1 = scmp.lt.s32.totalorder %s1119_s13, %s1478_s25 }
  0x1c   : > { %s1368_s12 = sshll.u32 %s1683_s11, 3 }
  0x1d   : > { %s272_s15 = scalar_lea.vmem %s2329_s0, %s1368_s12  ;;  %s2248_s12 = scalar_lea.hbm %s2322_s3, %s1369_s8 }
  0x1e   : > { %v1691_v7 = vld [vmem:[%s272_s15] sm:$0xff]  ;;  %s1473_s15 = scalar_lea.vmem %s1119_s13, 128 }
  0x1f   : > { %v432_v8 = vmul.f32 2.0, %v1691_v7  ;;  %v413_v24 = vmul.f32 %v1691_v7, %v1691_v7  ;;  %p1474_p12 = scmp.ne.s32.totalorder %s1119_s13, %s1473_s15  ;;  %p1481_p2 = scmp.lt.s32.totalorder %s1479_s27, %s1473_s15 }
  0x21   : > { %v434_v9 = vcombine.high %v432_v8, %v432_v8  ;;  %v415_v25 = vcombine.high %v413_v24, %v413_v24  ;;  %v418_v26 = vsel %vm2325_vm1, %v413_v24, 0.0  ;;  %p1475_p13 = pnand %p1474_p12, %p1660_p4  ;;  %p1482_p3 = por %p1481_p2, %p1480_p1 }
  0x22   : > { %v419_v28 = vrot.slane %v418_v26, 4 }
  0x23   : > { %1278 = vmatprep.subr.msk.mxu0 %vm2325_vm1, %v434_v9  ;;  %v425_v27 = vsel %vm2325_vm1, %v415_v25, 0.0  ;;  %p1476_p0 = pneg %p1475_p13 }
  0x24   : > { %1279 = vmatpush1.msk.msra.mxu0 %vm2325_vm1, %v432_v8  ;;  %v426_v29 = vrot.slane %v425_v27, 4  ;;  %v420_v30 = vadd.f32 %v419_v28, %v418_v26 }
  0x25   : > { %1280 = vmatmul.mubr.msk.f32.vlgmr.msra.gmra.mrb[0].mxu0 %vm315_vm0, %v282_v0  ;;  %p1483_p5 = pnand %p1482_p3, %p1476_p0 }
  0x26   : > { %557 = vmatprep.mubr.f32.mxu0 %v1585_v2  ;;  %v427_v31 = vadd.f32 %v426_v29, %v425_v27  ;;  %v421_v32 = vrot.slane %v420_v30, 2 }
  0x28   : > { %v428_v33 = vrot.slane %v427_v31, 2  ;;  %v422_v34 = vadd.f32 %v421_v32, %v420_v30 }
  0x29   : > { %1281 = vmatmul.mubr.msk.f32.gmra.mrb[2].mxu0 %vm315_vm0, %v283_v1 }
  0x2a   : > { %563 = vmatprep.mubr.f32.mxu0 %v1585_v2  ;;  %v429_v35 = vadd.f32 %v428_v33, %v427_v31  ;;  %v423_v36 = vrot.slane %v422_v34, 1 }
  0x2c   : > { %v430_v37 = vrot.slane %v429_v35, 1  ;;  %v1758_v40 = vadd.f32 %v423_v36, %v422_v34 }
  0x2d   : > { %1282 = vmatmul.mubr.msk.f32.gmra.mrb[4].mxu0 %vm315_vm0, %v284_v10 }
  0x2e   : > { %569 = vmatprep.mubr.f32.mxu0 %v1585_v2  ;;  %v1760_v41 = vadd.f32 %v430_v37, %v429_v35 }
  0x31   : > { %1283 = vmatmul.mubr.msk.f32.gmra.mrb[6].mxu0 %vm315_vm0, %v285_v11 }
  0x32   : > { %575 = vmatprep.mubr.f32.mxu0 %v1585_v2 }
  0x35   : > { %1284 = vmatmul.mubr.msk.f32.gmra.mrb[8].mxu0 %vm315_vm0, %v286_v12 }
  0x36   : > { %581 = vmatprep.mubr.f32.mxu0 %v1585_v2 }
  0x39   : > { %1285 = vmatmul.mubr.msk.f32.gmra.mrb[10].mxu0 %vm315_vm0, %v287_v13 }
  0x3a   : > { %587 = vmatprep.mubr.f32.mxu0 %v1585_v2 }
  0x3d   : > { %1286 = vmatmul.mubr.msk.f32.gmra.mrb[12].mxu0 %vm315_vm0, %v288_v14 }
  0x3e   : > { %593 = vmatprep.mubr.f32.mxu0 %v1585_v2 }
  0x41   : > { %1287 = vmatmul.mubr.msk.f32.gmra.mrb[14].mxu0 %vm315_vm0, %v289_v15 }
  0x42   : > { %599 = vmatprep.mubr.f32.mxu0 %v1585_v2 }
  0x45   : > { %1288 = vmatmul.mubr.msk.f32.gmra.mrb[16].mxu0 %vm315_vm0, %v290_v16 }
  0x46   : > { %605 = vmatprep.mubr.f32.mxu0 %v1585_v2 }
  0x49   : > { %1289 = vmatmul.mubr.msk.f32.gmra.mrb[18].mxu0 %vm315_vm0, %v291_v17 }
  0x4a   : > { %611 = vmatprep.mubr.f32.mxu0 %v1585_v2 }
  0x4d   : > { %1290 = vmatmul.mubr.msk.f32.gmra.mrb[20].mxu0 %vm315_vm0, %v292_v18 }
  0x4e   : > { %617 = vmatprep.mubr.f32.mxu0 %v1585_v2 }
  0x51   : > { %1291 = vmatmul.mubr.msk.f32.gmra.mrb[22].mxu0 %vm315_vm0, %v293_v19 }
  0x52   : > { %623 = vmatprep.mubr.f32.mxu0 %v1585_v2 }
  0x55   : > { %1292 = vmatmul.mubr.msk.f32.gmra.mrb[24].mxu0 %vm315_vm0, %v294_v20 }
  0x56   : > { %629 = vmatprep.mubr.f32.mxu0 %v1585_v2 }
  0x59   : > { %1293 = vmatmul.mubr.msk.f32.gmra.mrb[26].mxu0 %vm315_vm0, %v295_v21 }
  0x5a   : > { %635 = vmatprep.mubr.f32.mxu0 %v1585_v2 }
  0x5d   : > { %1294 = vmatmul.mubr.msk.f32.gmra.mrb[28].mxu0 %vm315_vm0, %v296_v22 }
  0x5e   : > { %641 = vmatprep.mubr.f32.mxu0 %v1585_v2 }
  0x61   : > { %1295 = vmatmul.mubr.msk.f32.gmra.mrb[30].mxu0 %vm315_vm0, %v297_v23 }
  0xa3   : > { %v318_v44 = vpop.xlane.xlu0 %317 }
  0xa7   : > { %v321_v56 = vpop.xlane.xlu0 %320 }
  0xf8   : > { %v553_v38 = vpop.f32.mrb[0].mxu0 }
  0xf9   : > { %v555_v39 = vpop.f32.mrb[1].mxu0  ;;  %v648_v45 = vsub.f32 %v1758_v40, %v553_v38 }
  0xfa   : > { %v649_v46 = vsub.f32 %v1760_v41, %v555_v39 }
  0xfb   : > { %v1766_v51 = vadd.f32 %v648_v45, %v318_v44 }
  0xfc   : > { %v559_v42 = vpop.f32.mrb[2].mxu0  ;;  %v1771_v54 = vadd.f32 %v649_v46, %v318_v44 }
  0xfd   : > { %v561_v43 = vpop.f32.mrb[3].mxu0  ;;  %v650_v52 = vsub.f32 %v1758_v40, %v559_v42 }
  0xfe   : > { %v651_v55 = vsub.f32 %v1760_v41, %v561_v43 }
  0xff   : > { %v1782_v0 = vadd.f32 %v650_v52, %v321_v56 }
 0x100   : > { %v565_v47 = vpop.f32.mrb[4].mxu0  ;;  %v1786_v2 = vadd.f32 %v651_v55, %v321_v56 }
 0x101   : > { %v652_v48 = vsub.f32 %v1758_v40, %v565_v47  ;;  %v567_v49 = vpop.f32.mrb[5].mxu0 }
 0x102   : > { %v653_v50 = vsub.f32 %v1760_v41, %v567_v49 }
 0x103   : > { %v1769_v53 = vadd.f32 inf, %v652_v48 }
 0x104   : > { %v1774_v57 = vadd.f32 inf, %v653_v50  ;;  %v571_v58 = vpop.f32.mrb[6].mxu0 }
 0x105   : > { %v712_v59 = vmin.f32 %v1766_v51, %v1769_v53  ;;  %v654_v60 = vsub.f32 %v1758_v40, %v571_v58  ;;  %v573_v61 = vpop.f32.mrb[7].mxu0 }
 0x106   : > { %v733_v62 = vmin.f32 %v1771_v54, %v1774_v57  ;;  %v655_v63 = vsub.f32 %v1760_v41, %v573_v61 }
 0x107   : > { %v1784_v1 = vadd.f32 inf, %v654_v60 }
 0x108   : > { %v1788_v3 = vadd.f32 inf, %v655_v63  ;;  %v577_v4 = vpop.f32.mrb[8].mxu0 }
 0x109   : > { %v713_v5 = vmin.f32 %v1782_v0, %v1784_v1  ;;  %v656_v6 = vsub.f32 %v1758_v40, %v577_v4  ;;  %v579_v8 = vpop.f32.mrb[9].mxu0 }
 0x10a   : > { %v734_v9 = vmin.f32 %v1786_v2, %v1788_v3  ;;  %v657_v10 = vsub.f32 %v1760_v41, %v579_v8 }
 0x10b   : > { %v1796_v11 = vadd.f32 inf, %v656_v6 }
 0x10c   : > { %v1798_v12 = vadd.f32 inf, %v657_v10  ;;  %v583_v13 = vpop.f32.mrb[10].mxu0 }
 0x10d   : > { %v714_v14 = vmin.f32 %v712_v59, %v1796_v11  ;;  %v658_v15 = vsub.f32 %v1758_v40, %v583_v13  ;;  %v585_v16 = vpop.f32.mrb[11].mxu0 }
 0x10e   : > { %v735_v17 = vmin.f32 %v733_v62, %v1798_v12  ;;  %v659_v18 = vsub.f32 %v1760_v41, %v585_v16 }
 0x10f   : > { %v1804_v19 = vadd.f32 inf, %v658_v15 }
 0x110   : > { %v1806_v20 = vadd.f32 inf, %v659_v18  ;;  %v589_v21 = vpop.f32.mrb[12].mxu0 }
 0x111   : > { %v715_v22 = vmin.f32 %v713_v5, %v1804_v19  ;;  %v660_v23 = vsub.f32 %v1758_v40, %v589_v21  ;;  %v591_v24 = vpop.f32.mrb[13].mxu0 }
 0x112   : > { %v736_v25 = vmin.f32 %v734_v9, %v1806_v20  ;;  %v661_v26 = vsub.f32 %v1760_v41, %v591_v24 }
 0x113   : > { %v1812_v27 = vadd.f32 inf, %v660_v23 }
 0x114   : > { %v1814_v28 = vadd.f32 inf, %v661_v26  ;;  %v595_v29 = vpop.f32.mrb[14].mxu0 }
 0x115   : > { %v716_v30 = vmin.f32 %v714_v14, %v1812_v27  ;;  %v662_v31 = vsub.f32 %v1758_v40, %v595_v29  ;;  %v597_v32 = vpop.f32.mrb[15].mxu0 }
 0x116   : > { %v737_v33 = vmin.f32 %v735_v17, %v1814_v28  ;;  %v663_v34 = vsub.f32 %v1760_v41, %v597_v32 }
 0x117   : > { %v1820_v35 = vadd.f32 inf, %v662_v31 }
 0x118   : > { %v1822_v36 = vadd.f32 inf, %v663_v34  ;;  %v601_v37 = vpop.f32.mrb[16].mxu0 }
 0x119   : > { %v717_v38 = vmin.f32 %v715_v22, %v1820_v35  ;;  %v664_v39 = vsub.f32 %v1758_v40, %v601_v37  ;;  %v603_v42 = vpop.f32.mrb[17].mxu0 }
 0x11a   : > { %v738_v43 = vmin.f32 %v736_v25, %v1822_v36  ;;  %v665_v44 = vsub.f32 %v1760_v41, %v603_v42 }
 0x11b   : > { %v1828_v45 = vadd.f32 inf, %v664_v39 }
 0x11c   : > { %v1830_v46 = vadd.f32 inf, %v665_v44  ;;  %v607_v47 = vpop.f32.mrb[18].mxu0 }
 0x11d   : > { %v718_v48 = vmin.f32 %v716_v30, %v1828_v45  ;;  %v666_v49 = vsub.f32 %v1758_v40, %v607_v47  ;;  %v609_v50 = vpop.f32.mrb[19].mxu0 }
 0x11e   : > { %v739_v52 = vmin.f32 %v737_v33, %v1830_v46  ;;  %v667_v55 = vsub.f32 %v1760_v41, %v609_v50 }
 0x11f   : > { %v1836_v56 = vadd.f32 inf, %v666_v49 }
 0x120   : > { %v1838_v58 = vadd.f32 inf, %v667_v55  ;;  %v613_v59 = vpop.f32.mrb[20].mxu0 }
 0x121   : > { %v719_v60 = vmin.f32 %v717_v38, %v1836_v56  ;;  %v668_v61 = vsub.f32 %v1758_v40, %v613_v59  ;;  %v615_v62 = vpop.f32.mrb[21].mxu0 }
 0x122   : > { %v740_v63 = vmin.f32 %v738_v43, %v1838_v58  ;;  %v669_v4 = vsub.f32 %v1760_v41, %v615_v62 }
 0x123   : > { %v1844_v5 = vadd.f32 inf, %v668_v61 }
 0x124   : > { %v1846_v6 = vadd.f32 inf, %v669_v4  ;;  %v619_v8 = vpop.f32.mrb[22].mxu0 }
 0x125   : > { %v720_v9 = vmin.f32 %v718_v48, %v1844_v5  ;;  %v670_v10 = vsub.f32 %v1758_v40, %v619_v8  ;;  %v621_v13 = vpop.f32.mrb[23].mxu0 }
 0x126   : > { %v741_v14 = vmin.f32 %v739_v52, %v1846_v6  ;;  %v671_v15 = vsub.f32 %v1760_v41, %v621_v13 }
 0x127   : > { %v1852_v16 = vadd.f32 inf, %v670_v10  ;;  %v364_v10 = vlaneseq }
 0x128   : > { %v1854_v17 = vadd.f32 inf, %v671_v15  ;;  %v625_v18 = vpop.f32.mrb[24].mxu0 }
 0x129   : > { %v721_v21 = vmin.f32 %v719_v60, %v1852_v16  ;;  %v672_v22 = vsub.f32 %v1758_v40, %v625_v18  ;;  %v627_v23 = vpop.f32.mrb[25].mxu0 }
 0x12a   : > { %v742_v24 = vmin.f32 %v740_v63, %v1854_v17  ;;  %v673_v25 = vsub.f32 %v1760_v41, %v627_v23 }
 0x12b   : > { %v1860_v26 = vadd.f32 inf, %v672_v22 }
 0x12c   : > { %v1862_v29 = vadd.f32 inf, %v673_v25  ;;  %v631_v30 = vpop.f32.mrb[26].mxu0 }
 0x12d   : > { %v722_v31 = vmin.f32 %v720_v9, %v1860_v26  ;;  %v674_v32 = vsub.f32 %v1758_v40, %v631_v30  ;;  %v633_v33 = vpop.f32.mrb[27].mxu0 }
 0x12e   : > { %v743_v34 = vmin.f32 %v741_v14, %v1862_v29  ;;  %v675_v37 = vsub.f32 %v1760_v41, %v633_v33 }
 0x12f   : > { %v1868_v38 = vadd.f32 inf, %v674_v32 }
 0x130   : > { %v1870_v39 = vadd.f32 inf, %v675_v37  ;;  %v637_v42 = vpop.f32.mrb[28].mxu0 }
 0x131   : > { %v723_v43 = vmin.f32 %v721_v21, %v1868_v38  ;;  %v676_v44 = vsub.f32 %v1758_v40, %v637_v42  ;;  %v639_v47 = vpop.f32.mrb[29].mxu0  ;;  %v1891_v21 = vshrl.u32 %v364_v10, 7 }
 0x132   : > { %v744_v48 = vmin.f32 %v742_v24, %v1870_v39  ;;  %v677_v49 = vsub.f32 %v1760_v41, %v639_v47 }
 0x133   : > { %v1876_v50 = vadd.f32 inf, %v676_v44  ;;  %v367_v25 = vadd.s32 16, %v1891_v21  ;;  %v368_v30 = vadd.s32 24, %v1891_v21  ;;  %v369_v32 = vadd.s32 32, %v1891_v21 }
 0x134   : > { %v1878_v52 = vadd.f32 inf, %v677_v49  ;;  %v643_v55 = vpop.f32.mrb[30].mxu0  ;;  %v370_v33 = vadd.s32 40, %v1891_v21  ;;  %v372_v42 = vadd.s32 56, %v1891_v21  ;;  %v374_v44 = vadd.s32 72, %v1891_v21 }
 0x135   : > { %v724_v59 = vmin.f32 %v722_v31, %v1876_v50  ;;  %v678_v60 = vsub.f32 %v1758_v40, %v643_v55  ;;  %v645_v61 = vpop.f32.mrb[31].mxu0  ;;  %v376_v49 = vadd.s32 88, %v1891_v21  ;;  %v377_v55 = vadd.s32 96, %v1891_v21 }
 0x136   : > { %v745_v62 = vmin.f32 %v743_v34, %v1878_v52  ;;  %v679_v63 = vsub.f32 %v1760_v41, %v645_v61  ;;  %v366_v41 = vadd.s32 8, %v1891_v21  ;;  %v371_v34 = vadd.s32 48, %v1891_v21 }
 0x137   : > { %v1884_v4 = vadd.f32 inf, %v678_v60  ;;  %v378_v60 = vadd.s32 104, %v1891_v21  ;;  %v1907_v61 = vadd.s32 112, %v1891_v21 }
 0x138   : > { %v1886_v8 = vadd.f32 inf, %v679_v63  ;;  %v1912_v63 = vcvt.s32.f32 %v366_v41 }
 0x139   : > { %v725_v9 = vmin.f32 %v723_v43, %v1884_v4  ;;  %v373_v43 = vadd.s32 64, %v1891_v21 }
 0x13a   : > { %v746_v13 = vmin.f32 %v744_v48, %v1886_v8  ;;  %v375_v48 = vadd.s32 80, %v1891_v21 }
 0x13b   : > { %v726_v14 = vmin.f32 %v724_v59, %v725_v9  ;;  %v1961_v41 = vcvt.s32.f32 %v373_v43  ;;  %v1989_v43 = vcvt.s32.f32 %v378_v60 }
 0x13c   : > { %v747_v15 = vmin.f32 %v745_v62, %v746_v13  ;;  %v1910_v62 = vcvt.s32.f32 %v1891_v21  ;;  %v1916_v13 = vcvt.s32.f32 %v367_v25  ;;  %v1963_v25 = vcvt.s32.f32 %v374_v44 }
 0x13d   : > { %v727_v18 = vrot.slane %v726_v14, 4 }
 0x13e   : > { %v748_v40 = vrot.slane %v747_v15, 4 }
 0x13f   : > { %v728_v22 = vmin.f32 %v726_v14, %v727_v18  ;;  %v1918_v14 = vcvt.s32.f32 %v368_v30  ;;  %v1922_v18 = vcvt.s32.f32 %v370_v33 }
 0x140   : > { %v749_v23 = vmin.f32 %v747_v15, %v748_v40  ;;  %v1920_v15 = vcvt.s32.f32 %v369_v32  ;;  %v1924_v40 = vcvt.s32.f32 %v371_v34 }
 0x141   : > { %v729_v24 = vrot.slane %v728_v22, 2 }
 0x142   : > { %v750_v31 = vrot.slane %v749_v23, 2 }
 0x143   : > { %v730_v37 = vmin.f32 %v728_v22, %v729_v24  ;;  %v1926_v22 = vcvt.s32.f32 %v372_v42  ;;  %v380_v24 = vadd.s32 120, %v1891_v21  ;;  %v1985_v42 = vcvt.s32.f32 %v376_v49 }
 0x144   : > { %v751_v47 = vmin.f32 %v749_v23, %v750_v31 }
 0x145   : > { %v731_v59 = vrot.slane %v730_v37, 1  ;;  %v2050_v60 = vcvt.s32.f32 %v380_v24 }
 0x146   : > { %v752_v23 = vrot.slane %v751_v47, 1 }
 0x147   : > { %v1914_v9 = vmin.f32 %v730_v37, %v731_v59  ;;  %v1983_v37 = vcvt.s32.f32 %v375_v48  ;;  %v2048_v59 = vcvt.s32.f32 %v1907_v61 }
 0x148   : > { %v1965_v30 = vmin.f32 %v751_v47, %v752_v23 }
 0x149   : > { %vm770_vm2 = vcmp.eq.f32.partialorder %v1766_v51, %v1914_v9  ;;  %vm772_vm3 = vcmp.eq.f32.partialorder %v1782_v0, %v1914_v9  ;;  %vm774_vm4 = vcmp.eq.f32.partialorder %v1769_v53, %v1914_v9  ;;  %vm776_vm5 = vcmp.eq.f32.partialorder %v1784_v1, %v1914_v9 }
 0x14a   : > { %vm778_vm6 = vcmp.eq.f32.partialorder %v1796_v11, %v1914_v9  ;;  %vm780_vm7 = vcmp.eq.f32.partialorder %v1804_v19, %v1914_v9  ;;  %vm782_vm8 = vcmp.eq.f32.partialorder %v1812_v27, %v1914_v9  ;;  %vm784_vm9 = vcmp.eq.f32.partialorder %v1820_v35, %v1914_v9 }
 0x14b   : > { %vm786_vm10 = vcmp.eq.f32.partialorder %v1828_v45, %v1914_v9  ;;  %vm788_vm11 = vcmp.eq.f32.partialorder %v1836_v56, %v1914_v9  ;;  %vm790_vm12 = vcmp.eq.f32.partialorder %v1844_v5, %v1914_v9  ;;  %vm792_vm13 = vcmp.eq.f32.partialorder %v1852_v16, %v1914_v9 }
 0x14c   : > { %vm794_vm14 = vcmp.eq.f32.partialorder %v1860_v26, %v1914_v9  ;;  %vm796_vm15 = vcmp.eq.f32.partialorder %v1868_v38, %v1914_v9  ;;  %v802_v31 = vsel %vm770_vm2, %v1910_v62, 128.0  ;;  %v804_v32 = vsel %vm772_vm3, %v1912_v63, 128.0 }
 0x14d   : > { %v806_v33 = vsel %vm774_vm4, %v1916_v13, 128.0  ;;  %v808_v34 = vsel %vm776_vm5, %v1918_v14, 128.0  ;;  %v1987_v51 = vcvt.s32.f32 %v377_v55  ;;  %v810_v0 = vsel %vm778_vm6, %v1920_v15, 128.0 }
 0x14e   : > { %v812_v53 = vsel %vm780_vm7, %v1922_v18, 128.0  ;;  %v814_v1 = vsel %vm782_vm8, %v1924_v40, 128.0  ;;  %v816_v44 = vsel %vm784_vm9, %v1926_v22, 128.0  ;;  %v834_v47 = vmin.f32 %v802_v31, %v806_v33 }
 0x14f   : > { %v835_v48 = vmin.f32 %v804_v32, %v808_v34  ;;  %vm771_vm2 = vcmp.eq.f32.partialorder %v1771_v54, %v1965_v30  ;;  %vm773_vm3 = vcmp.eq.f32.partialorder %v1786_v2, %v1965_v30  ;;  %vm775_vm4 = vcmp.eq.f32.partialorder %v1774_v57, %v1965_v30 }
 0x150   : > { %vm777_vm5 = vcmp.eq.f32.partialorder %v1788_v3, %v1965_v30  ;;  %v836_v11 = vmin.f32 %v834_v47, %v810_v0  ;;  %vm787_vm1 = vcmp.eq.f32.partialorder %v1830_v46, %v1965_v30  ;;  %vm789_vm0 = vcmp.eq.f32.partialorder %v1838_v58, %v1965_v30 }
 0x151   : > { %v837_v19 = vmin.f32 %v835_v48, %v812_v53  ;;  %vm795_vm8 = vcmp.eq.f32.partialorder %v1862_v29, %v1965_v30  ;;  %vm797_vm9 = vcmp.eq.f32.partialorder %v1870_v39, %v1965_v30  ;;  %v818_v49 = vsel %vm786_vm10, %v1961_v41, 128.0 }
 0x152   : > { %v838_v27 = vmin.f32 %v836_v11, %v814_v1  ;;  %v820_v55 = vsel %vm788_vm11, %v1963_v25, 128.0  ;;  %vm799_vm7 = vcmp.eq.f32.partialorder %v1878_v52, %v1965_v30  ;;  %vm801_vm6 = vcmp.eq.f32.partialorder %v1886_v8, %v1965_v30 }
 0x153   : > { %v839_v35 = vmin.f32 %v837_v19, %v816_v44  ;;  %v822_v45 = vsel %vm790_vm12, %v1983_v37, 128.0  ;;  %v824_v56 = vsel %vm792_vm13, %v1985_v42, 128.0  ;;  %v803_v61 = vsel %vm771_vm2, %v1910_v62, 128.0 }
 0x154   : > { %v840_v23 = vmin.f32 %v838_v27, %v818_v49  ;;  %v805_v24 = vsel %vm773_vm3, %v1912_v63, 128.0  ;;  %v807_v5 = vsel %vm775_vm4, %v1916_v13, 128.0  ;;  %v809_v16 = vsel %vm777_vm5, %v1918_v14, 128.0 }
 0x155   : > { %v841_v31 = vmin.f32 %v839_v35, %v820_v55  ;;  %v826_v54 = vsel %vm794_vm14, %v1987_v51, 128.0  ;;  %v828_v2 = vsel %vm796_vm15, %v1989_v43, 128.0  ;;  %vm2330_vm10 = vcmp.eq.f32.partialorder %v1876_v50, %v1914_v9 }
 0x156   : > { %v842_v32 = vmin.f32 %v840_v23, %v822_v45  ;;  %v830_v57 = vsel %vm2330_vm10, %v2048_v59, 128.0  ;;  %vm2331_vm11 = vcmp.eq.f32.partialorder %v1884_v4, %v1914_v9  ;;  %v855_v53 = vmin.f32 %v803_v61, %v807_v5 }
 0x157   : > { %v843_v33 = vmin.f32 %v841_v31, %v824_v56  ;;  %v832_v3 = vsel %vm2331_vm11, %v2050_v60, 128.0  ;;  %v856_v26 = vmin.f32 %v805_v24, %v809_v16  ;;  %vm2332_vm12 = vcmp.eq.f32.partialorder %v1798_v12, %v1965_v30 }
 0x158   : > { %v844_v34 = vmin.f32 %v842_v32, %v826_v54  ;;  %v811_v38 = vsel %vm2332_vm12, %v1920_v15, 128.0  ;;  %vm2333_vm13 = vcmp.eq.f32.partialorder %v1806_v20, %v1965_v30  ;;  %vm2334_vm14 = vcmp.eq.f32.partialorder %v1814_v28, %v1965_v30 }
 0x159   : > { %v845_v0 = vmin.f32 %v843_v33, %v828_v2  ;;  %v813_v50 = vsel %vm2333_vm13, %v1922_v18, 128.0  ;;  %v857_v47 = vmin.f32 %v855_v53, %v811_v38  ;;  %v815_v4 = vsel %vm2334_vm14, %v1924_v40, 128.0 }
 0x15a   : > { %v846_v1 = vmin.f32 %v844_v34, %v830_v57  ;;  %v858_v48 = vmin.f32 %v856_v26, %v813_v50  ;;  %vm2335_vm15 = vcmp.eq.f32.partialorder %v1822_v36, %v1965_v30  ;;  %v819_v20 = vsel %vm787_vm1, %v1961_v41, 128.0 }
 0x15b   : > { %v847_v44 = vmin.f32 %v845_v0, %v832_v3  ;;  %v817_v9 = vsel %vm2335_vm15, %v1926_v22, 128.0  ;;  %v859_v12 = vmin.f32 %v857_v47, %v815_v4  ;;  %v821_v35 = vsel %vm789_vm0, %v1963_v25, 128.0 }
 0x15c   : > { %v860_v19 = vmin.f32 %v858_v48, %v817_v9  ;;  %vm2336_vm2 = vcmp.eq.f32.partialorder %v1846_v6, %v1965_v30  ;;  %vm2337_vm3 = vcmp.eq.f32.partialorder %v1854_v17, %v1965_v30  ;;  %v827_v58 = vsel %vm795_vm8, %v1987_v51, 128.0 }
 0x15d   : > { %v848_v11 = vmin.f32 %v846_v1, %v847_v44  ;;  %v861_v28 = vmin.f32 %v859_v12, %v819_v20  ;;  %v823_v36 = vsel %vm2336_vm2, %v1983_v37, 128.0  ;;  %v825_v23 = vsel %vm2337_vm3, %v1985_v42, 128.0 }
 0x15e   : > { %v862_v49 = vmin.f32 %v860_v19, %v821_v35  ;;  %v829_v45 = vsel %vm797_vm9, %v1989_v43, 128.0  ;;  %v831_v17 = vsel %vm799_vm7, %v2048_v59, 128.0  ;;  %v833_v24 = vsel %vm801_vm6, %v2050_v60, 128.0 }
 0x15f   : > { %v849_v27 = vrot.slane %v848_v11, 4  ;;  %v863_v46 = vmin.f32 %v861_v28, %v823_v36  ;;  %v1586_v52 = vmov 1966171168   ;;  %v1587_v30 = vmov 1.0|1.0  }
 0x160   : > { %v864_v31 = vmin.f32 %v862_v49, %v825_v23  ;;  %v1052_v53 = vunpack.c.l.s4 %v1586_v52 }
 0x161   : > { %v850_v55 = vmin.f32 %v848_v11, %v849_v27  ;;  %v865_v56 = vmin.f32 %v863_v46, %v827_v58 }
 0x162   : > { %v866_v6 = vmin.f32 %v864_v31, %v829_v45  ;;  %v1053_v26 = vunpack.c.0.s8 %v1052_v53 }
 0x163   : > { %v851_v61 = vrot.slane %v850_v55, 2  ;;  %v867_v29 = vmin.f32 %v865_v56, %v831_v17 }
 0x164   : > { %v868_v32 = vmin.f32 %v866_v6, %v833_v24 }
 0x165   : > { %v852_v5 = vmin.f32 %v850_v55, %v851_v61 }
 0x166   : > { %v869_v33 = vmin.f32 %v867_v29, %v868_v32 }
 0x167   : > { %v853_v54 = vrot.slane %v852_v5, 1 }
 0x168   : > { %v870_v16 = vrot.slane %v869_v33, 4 }
 0x169   : > { %v2140_v0 = vmin.f32 %v852_v5, %v853_v54 }
 0x16a   : > { %v871_v39 = vmin.f32 %v869_v33, %v870_v16 }
 0x16b   : > { %vm876_vm1 = vcmp.eq.f32.partialorder %v1910_v62, %v2140_v0  ;;  %vm878_vm0 = vcmp.eq.f32.partialorder %v1912_v63, %v2140_v0  ;;  %v1403_v8 = vtrunc.f32 %v2140_v0  ;;  %vm880_vm11 = vcmp.eq.f32.partialorder %v1916_v13, %v2140_v0 }
 0x16c   : > { %v872_v2 = vrot.slane %v871_v39, 2  ;;  %vm1373_vm9 = vmpackc.low %vm878_vm0, %vm876_vm1  ;;  %vm882_vm12 = vcmp.eq.f32.partialorder %v1918_v14, %v2140_v0  ;;  %vm884_vm3 = vcmp.eq.f32.partialorder %v1920_v15, %v2140_v0  ;;  %vm886_vm1 = vcmp.eq.f32.partialorder %v1922_v18, %v2140_v0 }
 0x16d   : > { %vm1377_vm15 = vmpackc.low %vm882_vm12, %vm880_vm11 }
 0x16e   : > { %v873_v34 = vmin.f32 %v871_v39, %v872_v2 }
 0x170   : > { %v874_v57 = vrot.slane %v873_v34, 1 }
 0x172   : > { %v2142_v3 = vmin.f32 %v873_v34, %v874_v57 }
 0x174   : > { %vm877_vm4 = vcmp.eq.f32.partialorder %v1910_v62, %v2142_v3  ;;  %vm879_vm5 = vcmp.eq.f32.partialorder %v1912_v63, %v2142_v3  ;;  %vm881_vm6 = vcmp.eq.f32.partialorder %v1916_v13, %v2142_v3  ;;  %vm883_vm7 = vcmp.eq.f32.partialorder %v1918_v14, %v2142_v3 }
 0x175   : > { %vm1371_vm8 = vmpackc.low %vm879_vm5, %vm877_vm4  ;;  %vm885_vm13 = vcmp.eq.f32.partialorder %v1920_v15, %v2142_v3  ;;  %vm887_vm14 = vcmp.eq.f32.partialorder %v1922_v18, %v2142_v3  ;;  %v1404_v62 = vcvt.f32.s32 %v1403_v8  ;;  %v1405_v63 = vtrunc.f32 %v2142_v3 }
 0x176   : > { %1372 = vmatprep.subr.msk.bf16.mxu1 %vm1371_vm8, %v1587_v30  ;;  %vm1375_vm10 = vmpackc.low %vm883_vm7, %vm881_vm6  ;;  %v1056_v13 = vsub.s32 %v1053_v26, %v1891_v21  ;;  %vm889_vm0 = vcmp.eq.f32.partialorder %v1924_v40, %v2142_v3  ;;  %vm891_vm4 = vcmp.eq.f32.partialorder %v1926_v22, %v2142_v3  ;;  %vm888_vm7 = vcmp.eq.f32.partialorder %v1924_v40, %v2140_v0 }
 0x177   : > { %1374 = vmatpush1.bf16.msk.msra.mxu1 %vm1373_vm9, %v1587_v30  ;;  %v1406_v1 = vcvt.f32.s32 %v1405_v63  ;;  %vm1379_vm2 = vmpackc.low %vm887_vm14, %vm885_vm13  ;;  %vm890_vm8 = vcmp.eq.f32.partialorder %v1926_v22, %v2140_v0  ;;  %vm1067_vm9 = vcmp.lt.s32.totalorder %v364_v10, 256  ;;  %vm895_vm11 = vcmp.eq.f32.partialorder %v1963_v25, %v2142_v3  ;;  %v298_v10 = vld [vmem:[%s2321_s2] sm:$0xf] }
 0x178   : > { %1376 = vmatprep.subr.msk.bf16.mxu1 %vm1375_vm10, %v1587_v30  ;;  %vm1381_vm5 = vmpackc.low %vm886_vm1, %vm884_vm3  ;;  %vm893_vm10 = vcmp.eq.f32.partialorder %v1961_v41, %v2142_v3  ;;  %vm892_vm14 = vcmp.eq.f32.partialorder %v1961_v41, %v2140_v0  ;;  %vm899_vm3 = vcmp.eq.f32.partialorder %v1985_v42, %v2142_v3  ;;  %v1071_v18 = vcombine.high %v1691_v7, %v1691_v7 }
 0x179   : > { %v1050_v14 = vcombine.low %v1404_v62, %v1406_v1  ;;  %vm1383_vm6 = vmpackc.low %vm891_vm4, %vm889_vm0  ;;  %vm896_vm4 = vcmp.eq.f32.partialorder %v1983_v37, %v2140_v0 }
 0x17a   : > { %vm1385_vm12 = vmpackc.low %vm890_vm8, %vm888_vm7  ;;  %vm903_vm7 = vcmp.eq.f32.partialorder %v1989_v43, %v2142_v3 }
 0x17b   : > { %1378 = vmatpush1.bf16.msk.msra.mxu1 %vm1377_vm15, %v1587_v30  ;;  %v1057_v21 = vrot.slane %v1050_v14, %v1056_v13  ;;  %vm1387_vm13 = vmpackc.low %vm895_vm11, %vm893_vm10  ;;  %vm894_vm15 = vcmp.eq.f32.partialorder %v1963_v25, %v2140_v0  ;;  %vm900_vm10 = vcmp.eq.f32.partialorder %v1987_v51, %v2140_v0  ;;  %vm902_vm11 = vcmp.eq.f32.partialorder %v1989_v43, %v2140_v0 }
 0x17c   : > { %1380 = vmatprep.subr.msk.bf16.mxu1 %vm1379_vm2, %v1587_v30  ;;  %vm897_vm2 = vcmp.eq.f32.partialorder %v1983_v37, %v2142_v3  ;;  %vm1389_vm1 = vmpackc.low %vm894_vm15, %vm892_vm14 }
 0x17d   : > { %v1064_v15 = vrot.slane %v1057_v21, %v1056_v13  ;;  %vm1391_vm0 = vmpackc.low %vm899_vm3, %vm897_vm2  ;;  %vm904_vm2 = vcmp.eq.f32.partialorder %v2048_v59, %v2140_v0  ;;  %vm906_vm3 = vcmp.eq.f32.partialorder %v2050_v60, %v2140_v0 }
 0x17e   : > { %vm1397_vm14 = vmpackc.low %vm902_vm11, %vm900_vm10 }
 0x17f   : > { %1382 = vmatpush1.bf16.msk.msra.mxu1 %vm1381_vm5, %v1587_v30  ;;  %1069 = vst.msk [vmem:[%s2195_s24] sm:$0x3] %vm1067_vm9, %v1064_v15  ;;  %vm898_vm5 = vcmp.eq.f32.partialorder %v1985_v42, %v2140_v0 }
 0x180   : > { %1384 = vmatprep.subr.msk.bf16.mxu1 %vm1383_vm6, %v1587_v30  ;;  %vm901_vm6 = vcmp.eq.f32.partialorder %v1987_v51, %v2142_v3  ;;  %vm1393_vm8 = vmpackc.low %vm898_vm5, %vm896_vm4 }
 0x181   : > { %vm1395_vm9 = vmpackc.low %vm903_vm7, %vm901_vm6 }
 0x183   : > { %1386 = vmatpush1.bf16.msk.msra.mxu1 %vm1385_vm12, %v1587_v30  ;;  %vm905_vm12 = vcmp.eq.f32.partialorder %v2048_v59, %v2142_v3 }
 0x184   : > { %1388 = vmatprep.subr.msk.bf16.mxu1 %vm1387_vm13, %v1587_v30  ;;  %vm907_vm13 = vcmp.eq.f32.partialorder %v2050_v60, %v2142_v3 }
 0x185   : > { %vm1399_vm15 = vmpackc.low %vm907_vm13, %vm905_vm12 }
 0x187   : > { %1390 = vmatpush1.bf16.msk.msra.mxu1 %vm1389_vm1, %v1587_v30  ;;  %vm1401_vm1 = vmpackc.low %vm906_vm3, %vm904_vm2 }
 0x188   : > { %1392 = vmatprep.subr.msk.bf16.mxu1 %vm1391_vm0, %v1587_v30  ;;  %vm2338_vm0 = vcmask 1043456  }
 0x189   : > { %vm2339_vm4 = vmmov %vm2338_vm0 }
 0x18b   : > { %1394 = vmatpush1.bf16.msk.msra.mxu1 %vm1393_vm8, %v1587_v30 }
 0x18c   : > { %1396 = vmatprep.subr.msk.bf16.mxu1 %vm1395_vm9, %v1587_v30 }
 0x18f   : > { %1398 = vmatpush1.bf16.msk.msra.mxu1 %vm1397_vm14, %v1587_v30 }
 0x190   : > { %1400 = vmatprep.subr.msk.bf16.mxu1 %vm1399_vm15, %v1587_v30 }
 0x193   : > { %1402 = vmatpush1.bf16.msk.msra.mxu1 %vm1401_vm1, %v1587_v30 }
 0x196   : > { %1037 = vmatmul.mubr.f32.vlgmr.msra.gmra.mrb[0].mxu1 %v298_v10 }
 0x269   : > { %v1038_v40 = vpop.f32.mrb[0].mxu1 }
 0x26a   : > { %v1073_v22 = vsub.f32 %v1038_v40, %v1691_v7  ;;  %v1040_v41 = vpop.f32.mrb[1].mxu1 }
 0x26b   : > { %v1045_v25 = vcombine.low %v1038_v40, %v1040_v41  ;;  %v1074_v37 = vsub.f32 %v1040_v41, %v1071_v18 }
 0x26c   : > { %v1075_v42 = vmul.f32 %v1073_v22, %v1073_v22 }
 0x26d   : > { %1047 = vst [vmem:[%s250_s7] sm:$0xff] %v1045_v25  ;;  %v1076_v51 = vmul.f32 %v1074_v37, %v1074_v37 }
 0x26e   : > { %v1077_v43 = vsel %vm2338_vm0, %v1075_v42, 0.0 }
 0x26f   : > { %v1078_v59 = vsel %vm2339_vm4, %v1076_v51, 0.0 }
 0x270   : > { %v1079_v60 = vadd.f32 %v1078_v59, %v1077_v43 }
 0x272   : > { %1080 = vadd.xlane.f32.xlu1 %v1079_v60 }
 0x273   : > { %1486 = shalt.err (!%p1483_p5)
}
 0x274   : > { %s1487_s29 = scalar_lea.hbm %s2248_s12, 128  ;;  %s1491_s9 = scalar_lea.hbm %s2322_s3, 256 }
 0x275   : > { %p1488_p6 = scmp.ne.s32.totalorder %s2248_s12, %s1487_s29  ;;  %p1492_p10 = scmp.lt.u32.totalorder %s2248_s12, %s2322_s3 }
 0x276   : > { %p1493_p11 = scmp.lt.u32.totalorder %s1491_s9, %s1487_s29  ;;  %p1495_p13 = scmp.lt.u32.totalorder %s1487_s29, %s2248_s12 }
 0x277   : > { %p1489_p7 = pnand %p1488_p6, %p1660_p4 }
 0x278   : > { %p1494_p12 = por %p1493_p11, %p1492_p10 }
 0x279   : > { %p1490_p9 = pneg %p1489_p7 }
 0x27a   : > { %p1496_p0 = por %p1495_p13, %p1494_p12 }
 0x27c   : > { %p1497_p1 = pnand %p1496_p0, %p1490_p9 }
 0x27e   : > { %1500 = shalt.err (!%p1497_p1)
}
 0x27f   : > { %1409 = dma.vmem_to_hbm [thread:$0]  (%p1660_p4), %s1119_s13, 128, %s2248_s12, %s1093_s14  }
 0x280   : > { %s1370_s15 = sshll.u32 %s1575_s21, 5  ;;  %s1134_s25 = sshll.u32 %s2195_s24, 4  ;;  %s1135_s25 = int_to_ptr.vmem [resolvable:$true] %s1134_s25 }
 0x281   : > { %s2273_s8 = scalar_lea.hbm %s2323_s4, %s1370_s15  ;;  %s1098_s29 = scalar_lea.sflag [#allocation5], %s2170_s16 }
 0x282   : > { %s1501_s9 = scalar_lea.vmem %s1135_s25, 32  ;;  %s1589_s10 = smov [#allocation4]  }
 0x283   : > { %p1502_p2 = scmp.ne.s32.totalorder %s1135_s25, %s1501_s9  ;;  %s1505_s17 = sshll.u32 %s1589_s10, 4  ;;  %s1506_s17 = int_to_ptr.vmem [resolvable:$false] %s1505_s17 }
 0x284   : > { %s1507_s0 = scalar_lea.vmem %s1506_s17, 64  ;;  %p1508_p6 = scmp.lt.s32.totalorder %s1135_s25, %s1506_s17 }
 0x285   : > { %p1503_p3 = pnand %p1502_p2, %p1660_p4  ;;  %p1509_p7 = scmp.lt.s32.totalorder %s1507_s0, %s1501_s9 }
 0x287   : > { %p1504_p5 = pneg %p1503_p3  ;;  %p1510_p9 = por %p1509_p7, %p1508_p6 }
 0x289   : > { %p1511_p10 = pnand %p1510_p9, %p1504_p5 }
 0x28b   : > { %1514 = shalt.err (!%p1511_p10)
}
 0x28c   : > { %s1515_s21 = scalar_lea.hbm %s2273_s8, 32  ;;  %s1519_s12 = scalar_lea.hbm %s2323_s4, 64 }
 0x28d   : > { %p1516_p11 = scmp.ne.s32.totalorder %s2273_s8, %s1515_s21  ;;  %p1520_p0 = scmp.lt.u32.totalorder %s2273_s8, %s2323_s4 }
 0x28e   : > { %p1521_p1 = scmp.lt.u32.totalorder %s1519_s12, %s1515_s21  ;;  %p1523_p3 = scmp.lt.u32.totalorder %s1515_s21, %s2273_s8 }
 0x28f   : > { %p1517_p12 = pnand %p1516_p11, %p1660_p4 }
 0x290   : > { %p1522_p2 = por %p1521_p1, %p1520_p0 }
 0x291   : > { %p1518_p13 = pneg %p1517_p12 }
 0x292   : > { %p1524_p5 = por %p1523_p3, %p1522_p2 }
 0x294   : > { %p1525_p6 = pnand %p1524_p5, %p1518_p13 }
 0x296   : > { %1528 = shalt.err (!%p1525_p6)
}
 0x297   : > { %1410 = dma.vmem_to_hbm [thread:$0]  (%p1660_p4), %s1135_s25, 32, %s2273_s8, %s1098_s29   ;;  %vm1090_vm5 = vcmask 0  }
 0x298   : > { %s279_s27 = scalar_lea.vmem %s2324_s5, %s1683_s11 }
 0x2ff   : > { %v1081_v7 = vpop.xlane.xlu1 %1080 }
 0x300   : > { %v1082_v44 = vrot.slane %v1081_v7, 4 }
 0x302   : > { %v1083_v38 = vadd.f32 %v1082_v44, %v1081_v7 }
 0x304   : > { %v1084_v50 = vrot.slane %v1083_v38, 2 }
 0x306   : > { %v1085_v47 = vadd.f32 %v1084_v50, %v1083_v38 }
 0x308   : > { %v1086_v48 = vrot.slane %v1085_v47, 1 }
 0x30a   : > { %v1087_v11 = vadd.f32 %v1086_v48, %v1085_v47 }
 0x30c   : > { %1407 = vpush %v1087_v11 }
 0x33d   : > { %s1408_s7 = spop %1407 }
 0x33e   : > { %v1089_v4 = vstv %s1408_s7 }
 0x33f   : > { %1091 = vst.msk [vmem:[%s279_s27] sm:$0x1] %vm1090_vm5, %v1089_v4 }
 0x340 PF: > { %p1420_p4 = scmp.ge.s32.totalorder %s1583_s23, 2  ;;  %s1150_s28 = sand.u32 1, %s1563_s18  }
 0x341   : > { %s1151_s25 = scalar_lea.sflag [#allocation3], %s1150_s28 }
 0x342   : > { %p1414_p7 = pnand %p1420_p4, %p1667_p8 }
 0x344   : > { %1554 = dma.done.wait (!%p1414_p7), %s1151_s25, 128  }
 0x345   : > { %1556 = vsyncadd (!%p1414_p7), %s1151_s25, 4294967168  ;;  %s1160_s8 = scalar_lea.sflag [#allocation5], %s1150_s28 }
 0x346   : > { %1558 = dma.done.wait (!%p1414_p7), %s1160_s8, 32  }
 0x347   : > { %1560 = vsyncadd (!%p1414_p7), %s1160_s8, 4294967264  ;;  %s22_s23 = sadd.s32 1, %s1583_s23   ;;  %s2340_s18 = smov %s1567_s19 }
 0x348   : > { %p19_p9 = scmp.ge.s32.totalorder %s22_s23, 4   ;;  %s2341_s19 = smov %s1571_s20 }
 0x349   : > { %s2342_s20 = smov %s1673_s6  ;;  %s2343_s21 = smov %s1579_s22 }
 0x34a   : > { %s2344_s22 = smov %s2346_s26  ;;  %21 = sbr.rel (!%p19_p9) target bundleno = 8 (0x8), region = 96 }
 0x351   :  { %1172 = vsyncpa [#allocation3], 1 }
 0x352   :  { %1174 = vsyncpa [#allocation3 + $0x1], 1 }
 0x353   :  { %1175 = vsyncpa [#allocation5], 1 }
 0x354   :  { %1177 = vsyncpa [#allocation5 + $0x1], 1 }

</bundles_post_ra>
